<compile_context>
chip_gen: v6e
topology: v6e:2x2x1
jax: 0.10.0
libtpu: 0.0.40
codegen_flags: <defaults>
</compile_context>

<pallas_src>
import functools

import jax
import jax.numpy as jnp
from jax.experimental import pallas as pl
from jax.experimental.pallas import tpu as pltpu

BN_EPS = 1e-5
LANE = 128


def _round_up(n, m):
    return ((n + m - 1) // m) * m


def _vmem_cap_bytes():
    """<= 75% of this generation's physical VMEM (v7x: 64 MiB -> ~48 MiB)."""
    try:
        return int(pltpu.get_tpu_info().vmem_capacity_bytes * 3 // 4)
    except Exception:  # conservative fallback, safe on every generation
        return 48 << 20


# -----------------------------------------------------------------------------
# Kernel
# -----------------------------------------------------------------------------
def _make_mlp_kernel(n_hidden, batch):
    """Kernel over stacked refs.

    Refs: x (B, P) f32 | w_stack (L, P, P) mm_dtype | pack_stack (L, 3, P) f32
          | out (B, P) f32.   L = n_hidden + 1.
    """
    inv_n = 1.0 / float(batch)

    def kernel(x_ref, w_ref, pack_ref, out_ref):
        mm_dtype = w_ref.dtype
        h = x_ref[...]                                   # f32 activations
        # Hoisted once: MXU-side row-sum operand for the BN statistics.
        ones_row = jnp.ones((1, batch), jnp.float32)

        for l in range(n_hidden):
            w = w_ref[l]                                 # (P, P) mm_dtype
            pack = pack_ref[l]                           # (3, P) f32
            b, gamma, beta = pack[0:1, :], pack[1:2, :], pack[2:3, :]

            # Linear (MXU, f32 accumulate) + ReLU
            h = jnp.dot(h.astype(mm_dtype), w,
                        preferred_element_type=jnp.float32) + b
            h = jnp.maximum(h, 0.0)

            # BatchNorm1d (training mode, biased variance), single pass.
            # Sums go through the MXU (otherwise-idle slot) instead of a
            # VALU/XLU reduction tree.
            s1 = jnp.dot(ones_row, h, preferred_element_type=jnp.float32)
            s2 = jnp.dot(ones_row, h * h, preferred_element_type=jnp.float32)
            mean = s1 * inv_n
            var = jnp.maximum(s2 * inv_n - mean * mean, 0.0)
            scale = gamma * jax.lax.rsqrt(var + BN_EPS)
            shift = beta - mean * scale
            h = h * scale + shift

        # Final Linear + ReLU (relu=True, binary=False defaults)
        wl = w_ref[n_hidden]
        bl = pack_ref[n_hidden][0:1, :]
        y = jnp.dot(h.astype(mm_dtype), wl,
                    preferred_element_type=jnp.float32) + bl
        out_ref[...] = jnp.maximum(y, 0.0).astype(out_ref.dtype)

    return kernel


# -----------------------------------------------------------------------------
# One-time parameter preparation (hoisted out of the per-call forward)
# -----------------------------------------------------------------------------
def prepare_params(params, matmul_dtype=jnp.bfloat16):
    """Pad & pack params ONCE into two stacked device arrays.

    params: hidden layers {'w','b','gamma','beta'} (w: (in, out)); final {'w','b'}.
    Returns (w_stack, pack_stack, out_dim).
    """
    mm_dtype = jnp.dtype(matmul_dtype)
    in_dim = params[0]["w"].shape[0]
    dims = [in_dim] + [p["w"].shape[1] for p in params]
    out_dim = dims[-1]
    # Uniform padded width -> all layers share one (L,P,P)/(L,3,P) stack.
    # (For strongly skewed topologies per-layer widths would waste fewer MXU
    #  FLOPs, but the single stacked DMA wins at this scale.)
    P = _round_up(max(dims), LANE)

    w_blocks, pack_blocks = [], []
    for i, p in enumerate(params):
        w = p["w"]
        fi, fo = w.shape
        w_p = jnp.pad(w.astype(jnp.float32),
                      ((0, P - fi), (0, P - fo))).astype(mm_dtype)
        b = jnp.pad(p["b"].reshape(1, fo).astype(jnp.float32),
                    ((0, 0), (0, P - fo)))
        if i < len(params) - 1:                      # hidden layer: has BN
            gamma = jnp.pad(p["gamma"].reshape(1, fo).astype(jnp.float32),
                            ((0, 0), (0, P - fo)))
            beta = jnp.pad(p["beta"].reshape(1, fo).astype(jnp.float32),
                           ((0, 0), (0, P - fo)))
        else:                                        # final layer: rows unused
            gamma = jnp.zeros((1, P), jnp.float32)
            beta = jnp.zeros((1, P), jnp.float32)
        w_blocks.append(w_p)
        pack_blocks.append(jnp.concatenate([b, gamma, beta], axis=0))

    w_stack = jnp.stack(w_blocks, axis=0)            # (L, P, P) mm_dtype
    pack_stack = jnp.stack(pack_blocks, axis=0)      # (L, 3, P) f32
    return w_stack, pack_stack, out_dim


# -----------------------------------------------------------------------------
# Forward pass (jitted: x pad + pallas_call + tail slice fuse together)
# -----------------------------------------------------------------------------
@functools.partial(jax.jit, static_argnames=("out_dim",))
def neural_net_forward(x, w_stack, pack_stack, out_dim):
    batch, in_dim = x.shape
    n_layers, P, _ = w_stack.shape
    n_hidden = n_layers - 1

    x_p = jnp.pad(x.astype(jnp.float32), ((0, 0), (0, P - in_dim)))

    # VMEM budget: inputs + output slab + live-activation headroom, clamped to
    # a per-generation-safe fraction of physical VMEM.
    est = (x_p.size * 4
           + w_stack.size * w_stack.dtype.itemsize
           + pack_stack.size * 4
           + batch * P * 4            # output slab
           + 3 * batch * P * 4)       # activation headroom
    vmem_limit = int(min(max(2 * est, 16 << 20), _vmem_cap_bytes()))

    kernel = _make_mlp_kernel(n_hidden, batch)
    vmem = pl.BlockSpec(memory_space=pltpu.MemorySpace.VMEM)
    out_p = pl.pallas_call(
        kernel,
        out_shape=jax.ShapeDtypeStruct((batch, P), jnp.float32),
        in_specs=[vmem, vmem, vmem],
        out_specs=vmem,
        compiler_params=pltpu.CompilerParams(vmem_limit_bytes=vmem_limit),
    )(x_p, w_stack, pack_stack)

    # Lane-dense slab written in-kernel; slice the real outDim (fused by jit).
    return out_p[:, :out_dim]


# -----------------------------------------------------------------------------
# Pure-JAX reference (f32) for tolerance checks
# -----------------------------------------------------------------------------
def neural_net_reference(x, params):
    h = x.astype(jnp.float32)
    hp = jax.lax.Precision.HIGHEST
    for p in params[:-1]:
        h = jnp.maximum(jnp.dot(h, p["w"], precision=hp) + p["b"], 0.0)
        mean = jnp.mean(h, axis=0, keepdims=True)
        var = jnp.mean((h - mean) ** 2, axis=0, keepdims=True)
        h = (h - mean) * jax.lax.rsqrt(var + BN_EPS) * p["gamma"] + p["beta"]
    y = jnp.dot(h, params[-1]["w"], precision=hp) + params[-1]["b"]
    return jnp.maximum(y, 0.0)


# -----------------------------------------------------------------------------
# Synthetic init mirroring the PyTorch __init__ shapes
# -----------------------------------------------------------------------------
def init_params(key, input_dim, hidden_topology, out_dim):
    """Xavier-uniform weights (as in the module), PyTorch-default biases,
    BatchNorm gamma=1 / beta=0. Weights stored (in_features, out_features)."""
    topology = [input_dim] + list(hidden_topology)
    params = []
    for i in range(len(topology) - 1):
        fan_in, fan_out = topology[i], topology[i + 1]
        key, kw, kb = jax.random.split(key, 3)
        limit = (6.0 / (fan_in + fan_out)) ** 0.5
        w = jax.random.uniform(kw, (fan_in, fan_out), jnp.float32, -limit, limit)
        blim = 1.0 / (fan_in ** 0.5)
        b = jax.random.uniform(kb, (1, fan_out), jnp.float32, -blim, blim)
        params.append({
            "w": w, "b": b,
            "gamma": jnp.ones((1, fan_out), jnp.float32),
            "beta": jnp.zeros((1, fan_out), jnp.float32),
        })
    fan_in = hidden_topology[-1] if hidden_topology else input_dim
    key, kw, kb = jax.random.split(key, 3)
    limit = (6.0 / (fan_in + out_dim)) ** 0.5
    wf = jax.random.uniform(kw, (fan_in, out_dim), jnp.float32, -limit, limit)
    blim = 1.0 / (fan_in ** 0.5)
    bf = jax.random.uniform(kb, (1, out_dim), jnp.float32, -blim, blim)
    params.append({"w": wf, "b": bf})
    return params


if __name__ == "__main__":
    key = jax.random.PRNGKey(0)
    batch = 256            # fills the 256-row MXU M tile on v6e/v7x
    input_dim = 32
    hidden_topology = [64, 32]
    out_dim = 1

    key, kx, kp = jax.random.split(key, 3)
    x = jax.random.normal(kx, (batch, input_dim), jnp.float32)
    params = init_params(kp, input_dim, hidden_topology, out_dim)
    y_ref = neural_net_reference(x, params)

    # f32-operand path: near-exact vs. the pure-JAX reference.
    w32, p32, od = prepare_params(params, matmul_dtype=jnp.float32)
    y32 = neural_net_forward(x, w32, p32, out_dim=od)
    jax.block_until_ready(y32)
    assert y32.shape == (batch, out_dim)
    assert bool(jnp.all(jnp.isfinite(y32)))
    assert bool(jnp.allclose(y32, y_ref, rtol=5e-3, atol=5e-3)), \
        float(jnp.max(jnp.abs(y32 - y_ref)))

    # Default bf16-operand path (f32 accumulation): small, bounded drift.
    wbf, pbf, od = prepare_params(params)          # bfloat16 default
    ybf = neural_net_forward(x, wbf, pbf, out_dim=od)
    jax.block_until_ready(ybf)
    assert ybf.shape == (batch, out_dim)
    assert bool(jnp.all(jnp.isfinite(ybf)))
    assert float(jnp.max(jnp.abs(ybf - y_ref))) < 0.15

    print("KERNEL_OK")
</pallas_src>

<mosaic_0001>
module attributes {stable_mosaic.version = 11 : i64} {
  func.func @kernel(%arg0: memref<256x128xf32, #tpu.memory_space<vmem>>, %arg1: memref<3x128x128xf32, #tpu.memory_space<vmem>>, %arg2: memref<3x3x128xf32, #tpu.memory_space<vmem>>, %arg3: memref<256x128xf32, #tpu.memory_space<vmem>>) attributes {dimension_semantics = [], scalar_prefetch = 0 : i64, scratch_operands = 0 : i64, tpu.core_type = #tpu.core_type<tc>} {
    %c0 = arith.constant 0 : index
    %c0_0 = arith.constant 0 : index
    %0 = vector.load %arg0[%c0, %c0_0] : memref<256x128xf32, #tpu.memory_space<vmem>>, vector<256x128xf32>
    %cst = arith.constant 1.000000e+00 : f32
    %1 = vector.broadcast %cst : f32 to vector<1x256xf32>
    %c0_1 = arith.constant 0 : index
    %c0_2 = arith.constant 0 : index
    %c0_3 = arith.constant 0 : index
    %2 = vector.load %arg1[%c0_1, %c0_2, %c0_3] : memref<3x128x128xf32, #tpu.memory_space<vmem>>, vector<1x128x128xf32>
    %3 = vector.shape_cast %2 : vector<1x128x128xf32> to vector<128x128xf32>
    %c0_4 = arith.constant 0 : index
    %c0_5 = arith.constant 0 : index
    %c0_6 = arith.constant 0 : index
    %4 = vector.load %arg2[%c0_4, %c0_5, %c0_6] : memref<3x3x128xf32, #tpu.memory_space<vmem>>, vector<1x3x128xf32>
    %5 = vector.shape_cast %4 : vector<1x3x128xf32> to vector<3x128xf32>
    %6 = vector.extract_strided_slice %5 {offsets = [0, 0], sizes = [1, 128], strides = [1, 1]} : vector<3x128xf32> to vector<1x128xf32>
    %7 = vector.extract_strided_slice %5 {offsets = [1, 0], sizes = [1, 128], strides = [1, 1]} : vector<3x128xf32> to vector<1x128xf32>
    %8 = vector.extract_strided_slice %5 {offsets = [2, 0], sizes = [1, 128], strides = [1, 1]} : vector<3x128xf32> to vector<1x128xf32>
    %cst_7 = arith.constant dense<0.000000e+00> : vector<256x128xf32>
    %9 = tpu.matmul %0, %3, %cst_7 {dimension_numbers = #tpu.dot_dimension_numbers<[1], [0], [0], [1], [0, 0, 1, 1], [], []>} : vector<256x128xf32>, vector<128x128xf32>, vector<256x128xf32> -> vector<256x128xf32>
    %10 = vector.broadcast %6 : vector<1x128xf32> to vector<256x128xf32>
    %11 = arith.addf %9, %10 : vector<256x128xf32>
    %cst_8 = arith.constant 0.000000e+00 : f32
    %12 = vector.broadcast %cst_8 : f32 to vector<256x128xf32>
    %13 = arith.maximumf %11, %12 : vector<256x128xf32>
    %cst_9 = arith.constant dense<0.000000e+00> : vector<1x128xf32>
    %14 = tpu.matmul %1, %13, %cst_9 {dimension_numbers = #tpu.dot_dimension_numbers<[1], [0], [0], [1], [0, 0, 1, 1], [], []>} : vector<1x256xf32>, vector<256x128xf32>, vector<1x128xf32> -> vector<1x128xf32>
    %15 = arith.mulf %13, %13 : vector<256x128xf32>
    %cst_10 = arith.constant dense<0.000000e+00> : vector<1x128xf32>
    %16 = tpu.matmul %1, %15, %cst_10 {dimension_numbers = #tpu.dot_dimension_numbers<[1], [0], [0], [1], [0, 0, 1, 1], [], []>} : vector<1x256xf32>, vector<256x128xf32>, vector<1x128xf32> -> vector<1x128xf32>
    %cst_11 = arith.constant 3.906250e-03 : f32
    %17 = vector.broadcast %cst_11 : f32 to vector<1x128xf32>
    %18 = arith.mulf %14, %17 : vector<1x128xf32>
    %cst_12 = arith.constant 3.906250e-03 : f32
    %19 = vector.broadcast %cst_12 : f32 to vector<1x128xf32>
    %20 = arith.mulf %16, %19 : vector<1x128xf32>
    %21 = arith.mulf %18, %18 : vector<1x128xf32>
    %22 = arith.subf %20, %21 : vector<1x128xf32>
    %cst_13 = arith.constant 0.000000e+00 : f32
    %23 = vector.broadcast %cst_13 : f32 to vector<1x128xf32>
    %24 = arith.maximumf %22, %23 : vector<1x128xf32>
    %cst_14 = arith.constant 9.99999974E-6 : f32
    %25 = vector.broadcast %cst_14 : f32 to vector<1x128xf32>
    %26 = arith.addf %24, %25 : vector<1x128xf32>
    %27 = math.rsqrt %26 : vector<1x128xf32>
    %28 = arith.mulf %7, %27 : vector<1x128xf32>
    %29 = arith.mulf %18, %28 : vector<1x128xf32>
    %30 = arith.subf %8, %29 : vector<1x128xf32>
    %31 = vector.broadcast %28 : vector<1x128xf32> to vector<256x128xf32>
    %32 = arith.mulf %13, %31 : vector<256x128xf32>
    %33 = vector.broadcast %30 : vector<1x128xf32> to vector<256x128xf32>
    %34 = arith.addf %32, %33 : vector<256x128xf32>
    %c1 = arith.constant 1 : index
    %c0_15 = arith.constant 0 : index
    %c0_16 = arith.constant 0 : index
    %35 = vector.load %arg1[%c1, %c0_15, %c0_16] : memref<3x128x128xf32, #tpu.memory_space<vmem>>, vector<1x128x128xf32>
    %36 = vector.shape_cast %35 : vector<1x128x128xf32> to vector<128x128xf32>
    %c1_17 = arith.constant 1 : index
    %c0_18 = arith.constant 0 : index
    %c0_19 = arith.constant 0 : index
    %37 = vector.load %arg2[%c1_17, %c0_18, %c0_19] : memref<3x3x128xf32, #tpu.memory_space<vmem>>, vector<1x3x128xf32>
    %38 = vector.shape_cast %37 : vector<1x3x128xf32> to vector<3x128xf32>
    %39 = vector.extract_strided_slice %38 {offsets = [0, 0], sizes = [1, 128], strides = [1, 1]} : vector<3x128xf32> to vector<1x128xf32>
    %40 = vector.extract_strided_slice %38 {offsets = [1, 0], sizes = [1, 128], strides = [1, 1]} : vector<3x128xf32> to vector<1x128xf32>
    %41 = vector.extract_strided_slice %38 {offsets = [2, 0], sizes = [1, 128], strides = [1, 1]} : vector<3x128xf32> to vector<1x128xf32>
    %cst_20 = arith.constant dense<0.000000e+00> : vector<256x128xf32>
    %42 = tpu.matmul %34, %36, %cst_20 {dimension_numbers = #tpu.dot_dimension_numbers<[1], [0], [0], [1], [0, 0, 1, 1], [], []>} : vector<256x128xf32>, vector<128x128xf32>, vector<256x128xf32> -> vector<256x128xf32>
    %43 = vector.broadcast %39 : vector<1x128xf32> to vector<256x128xf32>
    %44 = arith.addf %42, %43 : vector<256x128xf32>
    %cst_21 = arith.constant 0.000000e+00 : f32
    %45 = vector.broadcast %cst_21 : f32 to vector<256x128xf32>
    %46 = arith.maximumf %44, %45 : vector<256x128xf32>
    %cst_22 = arith.constant dense<0.000000e+00> : vector<1x128xf32>
    %47 = tpu.matmul %1, %46, %cst_22 {dimension_numbers = #tpu.dot_dimension_numbers<[1], [0], [0], [1], [0, 0, 1, 1], [], []>} : vector<1x256xf32>, vector<256x128xf32>, vector<1x128xf32> -> vector<1x128xf32>
    %48 = arith.mulf %46, %46 : vector<256x128xf32>
    %cst_23 = arith.constant dense<0.000000e+00> : vector<1x128xf32>
    %49 = tpu.matmul %1, %48, %cst_23 {dimension_numbers = #tpu.dot_dimension_numbers<[1], [0], [0], [1], [0, 0, 1, 1], [], []>} : vector<1x256xf32>, vector<256x128xf32>, vector<1x128xf32> -> vector<1x128xf32>
    %cst_24 = arith.constant 3.906250e-03 : f32
    %50 = vector.broadcast %cst_24 : f32 to vector<1x128xf32>
    %51 = arith.mulf %47, %50 : vector<1x128xf32>
    %cst_25 = arith.constant 3.906250e-03 : f32
    %52 = vector.broadcast %cst_25 : f32 to vector<1x128xf32>
    %53 = arith.mulf %49, %52 : vector<1x128xf32>
    %54 = arith.mulf %51, %51 : vector<1x128xf32>
    %55 = arith.subf %53, %54 : vector<1x128xf32>
    %cst_26 = arith.constant 0.000000e+00 : f32
    %56 = vector.broadcast %cst_26 : f32 to vector<1x128xf32>
    %57 = arith.maximumf %55, %56 : vector<1x128xf32>
    %cst_27 = arith.constant 9.99999974E-6 : f32
    %58 = vector.broadcast %cst_27 : f32 to vector<1x128xf32>
    %59 = arith.addf %57, %58 : vector<1x128xf32>
    %60 = math.rsqrt %59 : vector<1x128xf32>
    %61 = arith.mulf %40, %60 : vector<1x128xf32>
    %62 = arith.mulf %51, %61 : vector<1x128xf32>
    %63 = arith.subf %41, %62 : vector<1x128xf32>
    %64 = vector.broadcast %61 : vector<1x128xf32> to vector<256x128xf32>
    %65 = arith.mulf %46, %64 : vector<256x128xf32>
    %66 = vector.broadcast %63 : vector<1x128xf32> to vector<256x128xf32>
    %67 = arith.addf %65, %66 : vector<256x128xf32>
    %c2 = arith.constant 2 : index
    %c0_28 = arith.constant 0 : index
    %c0_29 = arith.constant 0 : index
    %68 = vector.load %arg1[%c2, %c0_28, %c0_29] : memref<3x128x128xf32, #tpu.memory_space<vmem>>, vector<1x128x128xf32>
    %69 = vector.shape_cast %68 : vector<1x128x128xf32> to vector<128x128xf32>
    %c2_30 = arith.constant 2 : index
    %c0_31 = arith.constant 0 : index
    %c0_32 = arith.constant 0 : index
    %70 = vector.load %arg2[%c2_30, %c0_31, %c0_32] : memref<3x3x128xf32, #tpu.memory_space<vmem>>, vector<1x3x128xf32>
    %71 = vector.shape_cast %70 : vector<1x3x128xf32> to vector<3x128xf32>
    %72 = vector.extract_strided_slice %71 {offsets = [0, 0], sizes = [1, 128], strides = [1, 1]} : vector<3x128xf32> to vector<1x128xf32>
    %cst_33 = arith.constant dense<0.000000e+00> : vector<256x128xf32>
    %73 = tpu.matmul %67, %69, %cst_33 {dimension_numbers = #tpu.dot_dimension_numbers<[1], [0], [0], [1], [0, 0, 1, 1], [], []>} : vector<256x128xf32>, vector<128x128xf32>, vector<256x128xf32> -> vector<256x128xf32>
    %74 = vector.broadcast %72 : vector<1x128xf32> to vector<256x128xf32>
    %75 = arith.addf %73, %74 : vector<256x128xf32>
    %cst_34 = arith.constant 0.000000e+00 : f32
    %76 = vector.broadcast %cst_34 : f32 to vector<256x128xf32>
    %77 = arith.maximumf %75, %76 : vector<256x128xf32>
    %c0_35 = arith.constant 0 : index
    %c0_36 = arith.constant 0 : index
    %78 = vector.load %arg3[%c0_35, %c0_36] : memref<256x128xf32, #tpu.memory_space<vmem>>, vector<256x128xf32>
    tpu.vector_store %arg3[%c0_35, %c0_36], %77 {strides = array<i32>} : memref<256x128xf32, #tpu.memory_space<vmem>>, vector<256x128xf32>,
    return
  }
}

</mosaic_0001>

<bundles_post_ra>
// kernel: neural_net_forward.1
= control target key start
LH: loop header
LB: loop body
LE: loop exit
PB: predicated region body
PF: predicated region fallthrough
CT: control target
= control target key end

     0   :  { %v2041_v48 = vmov 1.0   ;;  %s3155_s1 = inlined_call_operand.vmem [shape: f32[3,128,128], index: 1, kind: input, shape index: {}]   ;;  %s3156_s0 = inlined_call_operand.vmem [shape: f32[256,128], index: 0, kind: input, shape index: {}]   ;;  %s3157_s2 = inlined_call_operand.vmem [shape: f32[3,3,128], index: 2, kind: input, shape index: {}]   ;;  %s3158_s3 = inlined_call_operand.vmem [shape: f32[256,128], index: 3, kind: output, shape index: {}]  }
   0x1   :  { %v61_v0 = vld [vmem:[%s3155_s1 + $0x78] sm:$0xff]  ;;  %v60_v1 = vld [vmem:[%s3155_s1 + $0x70] sm:$0xff]  ;;  %v59_v2 = vld [vmem:[%s3155_s1 + $0x68] sm:$0xff] }
   0x2   :  { %1764 = vmatprep.subr.mxu0 %v61_v0  ;;  %2004 = vmatprep.subr.mxu1 %v61_v0  ;;  %v58_v3 = vld [vmem:[%s3155_s1 + $0x60] sm:$0xff]  ;;  %v57_v4 = vld [vmem:[%s3155_s1 + $0x58] sm:$0xff]  ;;  %v56_v5 = vld [vmem:[%s3155_s1 + $0x50] sm:$0xff] }
   0x3   :  { %1765 = vmatpush3.msra.mxu0 %v61_v0  ;;  %2020 = vmatpush3.msra.mxu1 %v61_v0  ;;  %v55_v6 = vld [vmem:[%s3155_s1 + $0x48] sm:$0xff]  ;;  %v54_v7 = vld [vmem:[%s3155_s1 + $0x40] sm:$0xff]  ;;  %v53_v8 = vld [vmem:[%s3155_s1 + $0x38] sm:$0xff] }
   0x4   :  { %1766 = vmatprep.subr.mxu0 %v60_v1  ;;  %2005 = vmatprep.subr.mxu1 %v60_v1  ;;  %v52_v9 = vld [vmem:[%s3155_s1 + $0x30] sm:$0xff]  ;;  %v51_v10 = vld [vmem:[%s3155_s1 + $0x28] sm:$0xff]  ;;  %v50_v11 = vld [vmem:[%s3155_s1 + $0x20] sm:$0xff] }
   0x5   :  { %1767 = vmatpush3.msra.mxu0 %v60_v1  ;;  %2021 = vmatpush3.msra.mxu1 %v60_v1  ;;  %v49_v12 = vld [vmem:[%s3155_s1 + $0x18] sm:$0xff]  ;;  %v48_v13 = vld [vmem:[%s3155_s1 + $0x10] sm:$0xff]  ;;  %v47_v14 = vld [vmem:[%s3155_s1 + $0x8] sm:$0xff]  ;;  %v63_v1 = vlaneseq }
   0x6   :  { %1768 = vmatprep.subr.mxu0 %v59_v2  ;;  %2006 = vmatprep.subr.mxu1 %v59_v2  ;;  %v46_v15 = vld [vmem:[%s3155_s1] sm:$0xff]  ;;  %v15_v18 = vld [vmem:[%s3156_s0 + $0x8] sm:$0xff]  ;;  %v16_v20 = vld [vmem:[%s3156_s0 + $0x10] sm:$0xff] }
   0x7   :  { %1769 = vmatpush3.msra.mxu0 %v59_v2  ;;  %2022 = vmatpush3.msra.mxu1 %v59_v2  ;;  %v14_v16 = vld [vmem:[%s3156_s0] sm:$0xff]  ;;  %v31_v19 = vld [vmem:[%s3156_s0 + $0x88] sm:$0xff]  ;;  %v32_v21 = vld [vmem:[%s3156_s0 + $0x90] sm:$0xff] }
   0x8   :  { %1770 = vmatprep.subr.mxu0 %v58_v3  ;;  %2007 = vmatprep.subr.mxu1 %v58_v3  ;;  %v30_v17 = vld [vmem:[%s3156_s0 + $0x80] sm:$0xff]  ;;  %v17_v22 = vld [vmem:[%s3156_s0 + $0x18] sm:$0xff]  ;;  %v19_v26 = vld [vmem:[%s3156_s0 + $0x28] sm:$0xff] }
   0x9   :  { %1771 = vmatpush3.msra.mxu0 %v58_v3  ;;  %2023 = vmatpush3.msra.mxu1 %v58_v3  ;;  %v33_v23 = vld [vmem:[%s3156_s0 + $0x98] sm:$0xff]  ;;  %v18_v24 = vld [vmem:[%s3156_s0 + $0x20] sm:$0xff]  ;;  %v35_v27 = vld [vmem:[%s3156_s0 + $0xa8] sm:$0xff] }
   0xa   :  { %1772 = vmatprep.subr.mxu0 %v57_v4  ;;  %2008 = vmatprep.subr.mxu1 %v57_v4  ;;  %v34_v25 = vld [vmem:[%s3156_s0 + $0xa0] sm:$0xff]  ;;  %v20_v28 = vld [vmem:[%s3156_s0 + $0x30] sm:$0xff]  ;;  %v21_v30 = vld [vmem:[%s3156_s0 + $0x38] sm:$0xff] }
   0xb   :  { %1773 = vmatpush3.msra.mxu0 %v57_v4  ;;  %2024 = vmatpush3.msra.mxu1 %v57_v4  ;;  %v36_v29 = vld [vmem:[%s3156_s0 + $0xb0] sm:$0xff]  ;;  %v37_v31 = vld [vmem:[%s3156_s0 + $0xb8] sm:$0xff]  ;;  %v22_v32 = vld [vmem:[%s3156_s0 + $0x40] sm:$0xff] }
   0xc   :  { %1774 = vmatprep.subr.mxu0 %v56_v5  ;;  %2009 = vmatprep.subr.mxu1 %v56_v5  ;;  %v38_v33 = vld [vmem:[%s3156_s0 + $0xc0] sm:$0xff]  ;;  %v23_v34 = vld [vmem:[%s3156_s0 + $0x48] sm:$0xff]  ;;  %v24_v36 = vld [vmem:[%s3156_s0 + $0x50] sm:$0xff] }
   0xd   :  { %1775 = vmatpush3.msra.mxu0 %v56_v5  ;;  %2025 = vmatpush3.msra.mxu1 %v56_v5  ;;  %v39_v35 = vld [vmem:[%s3156_s0 + $0xc8] sm:$0xff]  ;;  %v40_v37 = vld [vmem:[%s3156_s0 + $0xd0] sm:$0xff]  ;;  %v25_v38 = vld [vmem:[%s3156_s0 + $0x58] sm:$0xff] }
   0xe   :  { %1776 = vmatprep.subr.mxu0 %v55_v6  ;;  %2010 = vmatprep.subr.mxu1 %v55_v6  ;;  %v41_v39 = vld [vmem:[%s3156_s0 + $0xd8] sm:$0xff]  ;;  %v26_v40 = vld [vmem:[%s3156_s0 + $0x60] sm:$0xff]  ;;  %v27_v42 = vld [vmem:[%s3156_s0 + $0x68] sm:$0xff] }
   0xf   :  { %1777 = vmatpush3.msra.mxu0 %v55_v6  ;;  %2026 = vmatpush3.msra.mxu1 %v55_v6  ;;  %v42_v41 = vld [vmem:[%s3156_s0 + $0xe0] sm:$0xff]  ;;  %v43_v43 = vld [vmem:[%s3156_s0 + $0xe8] sm:$0xff]  ;;  %v28_v44 = vld [vmem:[%s3156_s0 + $0x70] sm:$0xff]  ;;  %v2239_v6 = vshrl.u32 %v63_v1, 7 }
  0x10   :  { %1778 = vmatprep.subr.mxu0 %v54_v7  ;;  %2011 = vmatprep.subr.mxu1 %v54_v7  ;;  %v44_v45 = vld [vmem:[%s3156_s0 + $0xf0] sm:$0xff]  ;;  %v29_v46 = vld [vmem:[%s3156_s0 + $0x78] sm:$0xff] }
  0x11   :  { %1779 = vmatpush3.msra.mxu0 %v54_v7  ;;  %2027 = vmatpush3.msra.mxu1 %v54_v7  ;;  %v45_v47 = vld [vmem:[%s3156_s0 + $0xf8] sm:$0xff] }
  0x12   :  { %1780 = vmatprep.subr.mxu0 %v53_v8  ;;  %2012 = vmatprep.subr.mxu1 %v53_v8 }
  0x13   :  { %1781 = vmatpush3.msra.mxu0 %v53_v8  ;;  %2028 = vmatpush3.msra.mxu1 %v53_v8 }
  0x14   :  { %1782 = vmatprep.subr.mxu0 %v52_v9  ;;  %2013 = vmatprep.subr.mxu1 %v52_v9 }
  0x15   :  { %1783 = vmatpush3.msra.mxu0 %v52_v9  ;;  %2029 = vmatpush3.msra.mxu1 %v52_v9 }
  0x16   :  { %1784 = vmatprep.subr.mxu0 %v51_v10  ;;  %2014 = vmatprep.subr.mxu1 %v51_v10 }
  0x17   :  { %1785 = vmatpush3.msra.mxu0 %v51_v10  ;;  %2030 = vmatpush3.msra.mxu1 %v51_v10 }
  0x18   :  { %1786 = vmatprep.subr.mxu0 %v50_v11  ;;  %2015 = vmatprep.subr.mxu1 %v50_v11 }
  0x19   :  { %1787 = vmatpush3.msra.mxu0 %v50_v11  ;;  %2031 = vmatpush3.msra.mxu1 %v50_v11  ;;  %v2242_v11 = vsub.s32 0, %v2239_v6 }
  0x1a   :  { %1788 = vmatprep.subr.mxu0 %v49_v12  ;;  %2016 = vmatprep.subr.mxu1 %v49_v12 }
  0x1b   :  { %1789 = vmatpush3.msra.mxu0 %v49_v12  ;;  %2032 = vmatpush3.msra.mxu1 %v49_v12  ;;  %v2247_v12 = vld [vmem:[%s3157_s2] sm:$0x7] }
  0x1c   :  { %1790 = vmatprep.subr.mxu0 %v48_v13  ;;  %2017 = vmatprep.subr.mxu1 %v48_v13 }
  0x1d   :  { %1791 = vmatpush3.msra.mxu0 %v48_v13  ;;  %2033 = vmatpush3.msra.mxu1 %v48_v13 }
  0x1e   :  { %1792 = vmatprep.subr.mxu0 %v47_v14  ;;  %2018 = vmatprep.subr.mxu1 %v47_v14 }
  0x1f   :  { %1793 = vmatpush3.msra.mxu0 %v47_v14  ;;  %2034 = vmatpush3.msra.mxu1 %v47_v14 }
  0x20   :  { %1794 = vmatprep.subr.mxu0 %v46_v15  ;;  %2019 = vmatprep.subr.mxu1 %v46_v15 }
  0x21   :  { %1795 = vmatpush3.msra.mxu0 %v46_v15  ;;  %2035 = vmatpush3.msra.mxu1 %v46_v15 }
  0x22   :  { %1796 = vmatprep.mubr.f32.mxu0 %v14_v16  ;;  %1820 = vmatprep.mubr.f32.mxu1 %v30_v17  ;;  %v2251_v17 = vrot.slane %v2247_v12, %v2242_v11 }
  0x23   :  { %1797 = vmatmul.mubr.f32.vlgmr.msra.gmra.mxu0 %v15_v18  ;;  %1821 = vmatmul.mubr.f32.vlgmr.msra.gmra.mxu1 %v31_v19 }
  0x24   :  { %1799 = vmatprep.mubr.f32.mxu0 %v16_v20  ;;  %1823 = vmatprep.mubr.f32.mxu1 %v32_v21 }
  0x27   :  { %1800 = vmatmul.mubr.f32.gmra.mxu0 %v17_v22  ;;  %1824 = vmatmul.mubr.f32.gmra.mxu1 %v33_v23 }
  0x28   :  { %1802 = vmatprep.mubr.f32.mxu0 %v18_v24  ;;  %1826 = vmatprep.mubr.f32.mxu1 %v34_v25 }
  0x2b   :  { %1803 = vmatmul.mubr.f32.gmra.mxu0 %v19_v26  ;;  %1827 = vmatmul.mubr.f32.gmra.mxu1 %v35_v27 }
  0x2c   :  { %1805 = vmatprep.mubr.f32.mxu0 %v20_v28  ;;  %1829 = vmatprep.mubr.f32.mxu1 %v36_v29 }
  0x2f   :  { %1806 = vmatmul.mubr.f32.gmra.mxu0 %v21_v30  ;;  %1830 = vmatmul.mubr.f32.gmra.mxu1 %v37_v31 }
  0x30   :  { %1808 = vmatprep.mubr.f32.mxu0 %v22_v32  ;;  %1832 = vmatprep.mubr.f32.mxu1 %v38_v33 }
  0x33   :  { %1809 = vmatmul.mubr.f32.gmra.mxu0 %v23_v34  ;;  %1833 = vmatmul.mubr.f32.gmra.mxu1 %v39_v35 }
  0x34   :  { %1811 = vmatprep.mubr.f32.mxu0 %v24_v36  ;;  %1835 = vmatprep.mubr.f32.mxu1 %v40_v37 }
  0x37   :  { %1812 = vmatmul.mubr.f32.gmra.mxu0 %v25_v38  ;;  %1836 = vmatmul.mubr.f32.gmra.mxu1 %v41_v39 }
  0x38   :  { %1814 = vmatprep.mubr.f32.mxu0 %v26_v40  ;;  %1838 = vmatprep.mubr.f32.mxu1 %v42_v41 }
  0x3b   :  { %1815 = vmatmul.mubr.f32.gmra.mxu0 %v27_v42  ;;  %1839 = vmatmul.mubr.f32.gmra.mxu1 %v43_v43 }
  0x3c   :  { %1817 = vmatprep.mubr.f32.mxu0 %v28_v44  ;;  %1841 = vmatprep.mubr.f32.mxu1 %v44_v45 }
  0x3f   :  { %1818 = vmatmul.mubr.f32.gmra.mxu0 %v29_v46  ;;  %1842 = vmatmul.mubr.f32.gmra.mxu1 %v45_v47 }
  0x40   :  { %388 = vmatprep.mubr.f32.mxu1 %v2041_v48 }
  0xe3   :  { %v2207_v49 = vpop.f32.mrf.mxu0  ;;  %v2209_v50 = vpop.f32.mrf.mxu1 }
  0xe5   :  { %v2211_v51 = vpop.f32.mrf.mxu0  ;;  %v2213_v52 = vpop.f32.mrf.mxu1 }
  0xe7   :  { %v2215_v53 = vpop.f32.mrf.mxu0  ;;  %v2217_v54 = vpop.f32.mrf.mxu1 }
  0xe9   :  { %v2219_v55 = vpop.f32.mrf.mxu0  ;;  %v2221_v56 = vpop.f32.mrf.mxu1 }
  0xeb   :  { %v2223_v57 = vpop.f32.mrf.mxu0  ;;  %v2225_v58 = vpop.f32.mrf.mxu1 }
  0xed   :  { %v2227_v59 = vpop.f32.mrf.mxu0  ;;  %v2229_v60 = vpop.f32.mrf.mxu1 }
  0xef   :  { %v2231_v61 = vpop.f32.mrf.mxu0  ;;  %v2233_v62 = vpop.f32.mrf.mxu1 }
  0xf1   :  { %v2235_v63 = vpop.f32.mrf.mxu0  ;;  %v2237_v0 = vpop.f32.mrf.mxu1 }
  0xf3   :  { %v1810_v2 = vpop.f32.mrf.mxu0  ;;  %v1834_v3 = vpop.f32.mrf.mxu1 }
  0xf4   :  { %v259_v42 = vadd.f32 %v1834_v3, %v2251_v17  ;;  %v179_v44 = vadd.f32 %v1810_v2, %v2251_v17  ;;  %v249_v3 = vadd.f32 %v2233_v62, %v2251_v17  ;;  %v164_v62 = vadd.f32 %v2235_v63, %v2251_v17 }
  0xf5   :  { %v173_v4 = vpop.f32.mrf.mxu0  ;;  %v253_v5 = vpop.f32.mrf.mxu1  ;;  %v234_v63 = vadd.f32 %v2229_v60, %v2251_v17  ;;  %v149_v60 = vadd.f32 %v2215_v53, %v2251_v17  ;;  %v219_v53 = vadd.f32 %v2209_v50, %v2251_v17  ;;  %v134_v50 = vadd.f32 %v2211_v51, %v2251_v17 }
  0xf6   :  { %v254_v46 = vadd.f32 %v253_v5, %v2251_v17  ;;  %v174_v1 = vadd.f32 %v173_v4, %v2251_v17  ;;  %v2305_v2 = vmax.f32 %v259_v42, 0.0  ;;  %v169_v5 = vadd.f32 %v2231_v61, %v2251_v17 }
  0xf7   :  { %v1813_v7 = vpop.f32.mrf.mxu0  ;;  %v1837_v8 = vpop.f32.mrf.mxu1  ;;  %v244_v4 = vadd.f32 %v2237_v0, %v2251_v17  ;;  %v239_v61 = vadd.f32 %v2225_v58, %v2251_v17  ;;  %v159_v0 = vadd.f32 %v2223_v57, %v2251_v17  ;;  %v154_v58 = vadd.f32 %v2227_v59, %v2251_v17 }
  0xf8   :  { %v269_v34 = vadd.f32 %v1837_v8, %v2251_v17  ;;  %v189_v36 = vadd.f32 %v1813_v7, %v2251_v17  ;;  %v2310_v8 = vmax.f32 %v179_v44, 0.0  ;;  %v229_v57 = vadd.f32 %v2217_v54, %v2251_v17 }
  0xf9   :  { %v183_v9 = vpop.f32.mrf.mxu0  ;;  %v263_v10 = vpop.f32.mrf.mxu1  ;;  %v224_v59 = vadd.f32 %v2221_v56, %v2251_v17  ;;  %v144_v54 = vadd.f32 %v2219_v55, %v2251_v17  ;;  %v139_v56 = vadd.f32 %v2207_v49, %v2251_v17  ;;  %v214_v55 = vadd.f32 %v2213_v52, %v2251_v17 }
  0xfa   :  { %v264_v38 = vadd.f32 %v263_v10, %v2251_v17  ;;  %v184_v40 = vadd.f32 %v183_v9, %v2251_v17  ;;  %v2288_v43 = vmax.f32 %v269_v34, 0.0  ;;  %v2292_v45 = vmax.f32 %v189_v36, 0.0 }
  0xfb   :  { %v1816_v13 = vpop.f32.mrf.mxu0  ;;  %v1840_v14 = vpop.f32.mrf.mxu1  ;;  %v2315_v9 = vmax.f32 %v254_v46, 0.0  ;;  %v2320_v10 = vmax.f32 %v174_v1, 0.0  ;;  %v2386_v49 = vmax.f32 %v139_v56, 0.0  ;;  %v2389_v52 = vmax.f32 %v214_v55, 0.0 }
  0xfc   :  { %v279_v27 = vadd.f32 %v1840_v14, %v2251_v17  ;;  %v199_v29 = vadd.f32 %v1816_v13, %v2251_v17  ;;  %v2296_v47 = vmax.f32 %v264_v38, 0.0  ;;  %v2300_v7 = vmax.f32 %v184_v40, 0.0 }
  0xfd   :  { %v193_v15 = vpop.f32.mrf.mxu0  ;;  %v273_v16 = vpop.f32.mrf.mxu1  ;;  %v2325_v13 = vmax.f32 %v249_v3, 0.0  ;;  %v2330_v14 = vmax.f32 %v169_v5, 0.0  ;;  %v421_v42 = vmul.f32 %v2288_v43, %v2288_v43  ;;  %v405_v44 = vmul.f32 %v2292_v45, %v2292_v45 }
  0xfe   :  { %v274_v32 = vadd.f32 %v273_v16, %v2251_v17  ;;  %v194_v33 = vadd.f32 %v193_v15, %v2251_v17  ;;  %v2272_v35 = vmax.f32 %v279_v27, 0.0  ;;  %v2276_v37 = vmax.f32 %v199_v29, 0.0 }
  0xff   :  { %v1819_v18 = vpop.f32.mrf.mxu0  ;;  %v1843_v19 = vpop.f32.mrf.mxu1  ;;  %v2335_v15 = vmax.f32 %v244_v4, 0.0  ;;  %v2340_v16 = vmax.f32 %v164_v62, 0.0  ;;  %v2383_v27 = vmax.f32 %v219_v53, 0.0  ;;  %v2392_v29 = vmax.f32 %v134_v50, 0.0 }
 0x100   :  { %v209_v20 = vadd.f32 %v1819_v18, %v2251_v17  ;;  %v289_v21 = vadd.f32 %v1843_v19, %v2251_v17  ;;  %v2280_v39 = vmax.f32 %v274_v32, 0.0  ;;  %v2284_v41 = vmax.f32 %v194_v33, 0.0 }
 0x101   :  { %v203_v22 = vpop.f32.mrf.mxu0  ;;  %v283_v23 = vpop.f32.mrf.mxu1  ;;  %v2345_v18 = vmax.f32 %v239_v61, 0.0  ;;  %v2350_v19 = vmax.f32 %v159_v0, 0.0  ;;  %v423_v34 = vmul.f32 %v2272_v35, %v2272_v35  ;;  %v407_v36 = vmul.f32 %v2276_v37, %v2276_v37 }
 0x102   :  { %v2255_v24 = vmax.f32 %v209_v20, 0.0  ;;  %v204_v25 = vadd.f32 %v203_v22, %v2251_v17  ;;  %v284_v26 = vadd.f32 %v283_v23, %v2251_v17  ;;  %v2260_v28 = vmax.f32 %v289_v21, 0.0 }
 0x103   :  { %v2355_v20 = vmax.f32 %v234_v63, 0.0  ;;  %v2360_v21 = vmax.f32 %v154_v58, 0.0  ;;  %v2365_v22 = vmax.f32 %v229_v57, 0.0  ;;  %v2370_v23 = vmax.f32 %v149_v60, 0.0 }
 0x104   :  { %v2263_v30 = vmax.f32 %v204_v25, 0.0  ;;  %v2265_v31 = vmax.f32 %v284_v26, 0.0  ;;  %1528 = vmatprep.subr.mxu1 %v2260_v28  ;;  %v2375_v25 = vmax.f32 %v224_v59, 0.0  ;;  %v2380_v26 = vmax.f32 %v144_v54, 0.0 }
 0x105   :  { %1529 = vmatpush3.msra.mxu1 %v2255_v24  ;;  %v425_v51 = vmul.f32 %v2260_v28, %v2260_v28  ;;  %v409_v17 = vmul.f32 %v2255_v24, %v2255_v24  ;;  %v422_v38 = vmul.f32 %v2280_v39, %v2280_v39  ;;  %v406_v40 = vmul.f32 %v2284_v41, %v2284_v41 }
 0x106   :  { %1530 = vmatprep.subr.mxu1 %v2265_v31  ;;  %v424_v32 = vmul.f32 %v2265_v31, %v2265_v31  ;;  %v408_v33 = vmul.f32 %v2263_v30, %v2263_v30  ;;  %v420_v46 = vmul.f32 %v2296_v47, %v2296_v47  ;;  %v404_v1 = vmul.f32 %v2300_v7, %v2300_v7 }
 0x107   :  { %1531 = vmatpush3.msra.mxu1 %v2263_v30  ;;  %v419_v3 = vmul.f32 %v2305_v2, %v2305_v2  ;;  %v403_v5 = vmul.f32 %v2310_v8, %v2310_v8  ;;  %v418_v4 = vmul.f32 %v2315_v9, %v2315_v9  ;;  %v402_v62 = vmul.f32 %v2320_v10, %v2320_v10 }
 0x108   :  { %1532 = vmatprep.subr.mxu1 %v2272_v35  ;;  %v417_v61 = vmul.f32 %v2325_v13, %v2325_v13  ;;  %v401_v0 = vmul.f32 %v2330_v14, %v2330_v14  ;;  %v416_v63 = vmul.f32 %v2335_v15, %v2335_v15  ;;  %v400_v58 = vmul.f32 %v2340_v16, %v2340_v16 }
 0x109   :  { %1533 = vmatpush3.msra.mxu1 %v2276_v37  ;;  %v415_v57 = vmul.f32 %v2345_v18, %v2345_v18  ;;  %v399_v60 = vmul.f32 %v2350_v19, %v2350_v19  ;;  %v414_v59 = vmul.f32 %v2355_v20, %v2355_v20  ;;  %v398_v54 = vmul.f32 %v2360_v21, %v2360_v21 }
 0x10a   :  { %1534 = vmatprep.subr.mxu1 %v2280_v39  ;;  %v413_v53 = vmul.f32 %v2365_v22, %v2365_v22  ;;  %v397_v56 = vmul.f32 %v2370_v23, %v2370_v23  ;;  %v412_v55 = vmul.f32 %v2375_v25, %v2375_v25  ;;  %v396_v50 = vmul.f32 %v2380_v26, %v2380_v26 }
 0x10b   :  { %1535 = vmatpush3.msra.mxu1 %v2284_v41 }
 0x10c   :  { %1536 = vmatprep.subr.mxu1 %v2288_v43 }
 0x10d   :  { %1537 = vmatpush3.msra.mxu1 %v2292_v45 }
 0x10e   :  { %1538 = vmatprep.subr.mxu1 %v2296_v47 }
 0x10f   :  { %1539 = vmatpush3.msra.mxu1 %v2300_v7 }
 0x110   :  { %1540 = vmatprep.subr.mxu1 %v2305_v2 }
 0x111   :  { %1541 = vmatpush3.msra.mxu1 %v2310_v8 }
 0x112   :  { %1542 = vmatprep.subr.mxu1 %v2315_v9 }
 0x113   :  { %1543 = vmatpush3.msra.mxu1 %v2320_v10 }
 0x114   :  { %1544 = vmatprep.subr.mxu1 %v2325_v13 }
 0x115   :  { %1545 = vmatpush3.msra.mxu1 %v2330_v14 }
 0x116   :  { %1546 = vmatprep.subr.mxu1 %v2335_v15 }
 0x117   :  { %1547 = vmatpush3.msra.mxu1 %v2340_v16 }
 0x118   :  { %1548 = vmatprep.subr.mxu1 %v2345_v18 }
 0x119   :  { %1549 = vmatpush3.msra.mxu1 %v2350_v19 }
 0x11a   :  { %1550 = vmatprep.subr.mxu1 %v2355_v20 }
 0x11b   :  { %1551 = vmatpush3.msra.mxu1 %v2360_v21 }
 0x11c   :  { %1552 = vmatprep.subr.mxu1 %v2365_v22 }
 0x11d   :  { %1553 = vmatpush3.msra.mxu1 %v2370_v23 }
 0x11e   :  { %1554 = vmatprep.subr.mxu1 %v2375_v25 }
 0x11f   :  { %1555 = vmatpush3.msra.mxu1 %v2380_v26 }
 0x120   :  { %1556 = vmatprep.subr.mxu1 %v2383_v27 }
 0x121   :  { %1557 = vmatpush3.msra.mxu1 %v2386_v49 }
 0x122   :  { %1558 = vmatprep.subr.mxu1 %v2389_v52 }
 0x123   :  { %1559 = vmatpush3.msra.mxu1 %v2392_v29 }
 0x124   :  { %389 = vmatmul.mubr.f32.vlgmr.msra.gmra.mxu1 %v2041_v48  ;;  %1563 = vmatprep.subr.mxu1 %v425_v51  ;;  %v411_v51 = vmul.f32 %v2383_v27, %v2383_v27 }
 0x125   :  { %1564 = vmatpush3.msra.mxu1 %v409_v17  ;;  %490 = vmatprep.mubr.f32.mxu1 %v2041_v48  ;;  %v395_v17 = vmul.f32 %v2386_v49, %v2386_v49 }
 0x126   :  { %1565 = vmatprep.subr.mxu1 %v424_v32  ;;  %v410_v32 = vmul.f32 %v2389_v52, %v2389_v52 }
 0x127   :  { %1566 = vmatpush3.msra.mxu1 %v408_v33  ;;  %v394_v33 = vmul.f32 %v2392_v29, %v2392_v29 }
 0x128   :  { %1567 = vmatprep.subr.mxu1 %v423_v34  ;;  %v1461_v34 = vld [vmem:[%s3155_s1 + $0xf8] sm:$0xff] }
 0x129   :  { %1568 = vmatpush3.msra.mxu1 %v407_v36  ;;  %1844 = vmatprep.subr.mxu0 %v1461_v34  ;;  %v1460_v36 = vld [vmem:[%s3155_s1 + $0xf0] sm:$0xff] }
 0x12a   :  { %1569 = vmatprep.subr.mxu1 %v422_v38  ;;  %1845 = vmatpush3.msra.mxu0 %v1461_v34  ;;  %v1459_v38 = vld [vmem:[%s3155_s1 + $0xe8] sm:$0xff] }
 0x12b   :  { %1570 = vmatpush3.msra.mxu1 %v406_v40  ;;  %1846 = vmatprep.subr.mxu0 %v1460_v36  ;;  %v1458_v40 = vld [vmem:[%s3155_s1 + $0xe0] sm:$0xff] }
 0x12c   :  { %1571 = vmatprep.subr.mxu1 %v421_v42  ;;  %1847 = vmatpush3.msra.mxu0 %v1460_v36  ;;  %v1457_v42 = vld [vmem:[%s3155_s1 + $0xd8] sm:$0xff] }
 0x12d   :  { %1572 = vmatpush3.msra.mxu1 %v405_v44  ;;  %1848 = vmatprep.subr.mxu0 %v1459_v38  ;;  %v1456_v44 = vld [vmem:[%s3155_s1 + $0xd0] sm:$0xff] }
 0x12e   :  { %1573 = vmatprep.subr.mxu1 %v420_v46  ;;  %1849 = vmatpush3.msra.mxu0 %v1459_v38  ;;  %v1455_v46 = vld [vmem:[%s3155_s1 + $0xc8] sm:$0xff] }
 0x12f   :  { %1574 = vmatpush3.msra.mxu1 %v404_v1  ;;  %1850 = vmatprep.subr.mxu0 %v1458_v40  ;;  %v1454_v1 = vld [vmem:[%s3155_s1 + $0xc0] sm:$0xff] }
 0x130   :  { %1575 = vmatprep.subr.mxu1 %v419_v3  ;;  %1851 = vmatpush3.msra.mxu0 %v1458_v40  ;;  %v1453_v3 = vld [vmem:[%s3155_s1 + $0xb8] sm:$0xff] }
 0x131   :  { %1576 = vmatpush3.msra.mxu1 %v403_v5  ;;  %1852 = vmatprep.subr.mxu0 %v1457_v42  ;;  %v1452_v5 = vld [vmem:[%s3155_s1 + $0xb0] sm:$0xff] }
 0x132   :  { %1577 = vmatprep.subr.mxu1 %v418_v4  ;;  %1853 = vmatpush3.msra.mxu0 %v1457_v42  ;;  %v1451_v4 = vld [vmem:[%s3155_s1 + $0xa8] sm:$0xff]  ;;  %v517_v42 = vsub.s32 1, %v2239_v6 }
 0x133   :  { %1578 = vmatpush3.msra.mxu1 %v402_v62  ;;  %1854 = vmatprep.subr.mxu0 %v1456_v44  ;;  %v1450_v62 = vld [vmem:[%s3155_s1 + $0xa0] sm:$0xff] }
 0x134   :  { %1579 = vmatprep.subr.mxu1 %v417_v61  ;;  %1855 = vmatpush3.msra.mxu0 %v1456_v44  ;;  %v1449_v61 = vld [vmem:[%s3155_s1 + $0x98] sm:$0xff] }
 0x135   :  { %1580 = vmatpush3.msra.mxu1 %v401_v0  ;;  %1856 = vmatprep.subr.mxu0 %v1455_v46  ;;  %v1448_v0 = vld [vmem:[%s3155_s1 + $0x90] sm:$0xff] }
 0x136   :  { %1581 = vmatprep.subr.mxu1 %v416_v63  ;;  %1857 = vmatpush3.msra.mxu0 %v1455_v46  ;;  %v1447_v63 = vld [vmem:[%s3155_s1 + $0x88] sm:$0xff] }
 0x137   :  { %1582 = vmatpush3.msra.mxu1 %v400_v58  ;;  %1858 = vmatprep.subr.mxu0 %v1454_v1  ;;  %v1446_v58 = vld [vmem:[%s3155_s1 + $0x80] sm:$0xff] }
 0x138   :  { %1583 = vmatprep.subr.mxu1 %v415_v57  ;;  %1859 = vmatpush3.msra.mxu0 %v1454_v1  ;;  %v553_v1 = vsub.s32 2, %v2239_v6 }
 0x139   :  { %1584 = vmatpush3.msra.mxu1 %v399_v60  ;;  %1860 = vmatprep.subr.mxu0 %v1453_v3 }
 0x13a   :  { %1585 = vmatprep.subr.mxu1 %v414_v59  ;;  %1861 = vmatpush3.msra.mxu0 %v1453_v3 }
 0x13b   :  { %1586 = vmatpush3.msra.mxu1 %v398_v54  ;;  %1862 = vmatprep.subr.mxu0 %v1452_v5 }
 0x13c   :  { %1587 = vmatprep.subr.mxu1 %v413_v53  ;;  %1863 = vmatpush3.msra.mxu0 %v1452_v5 }
 0x13d   :  { %1588 = vmatpush3.msra.mxu1 %v397_v56  ;;  %1864 = vmatprep.subr.mxu0 %v1451_v4 }
 0x13e   :  { %1589 = vmatprep.subr.mxu1 %v412_v55  ;;  %1865 = vmatpush3.msra.mxu0 %v1451_v4 }
 0x13f   :  { %1590 = vmatpush3.msra.mxu1 %v396_v50  ;;  %1866 = vmatprep.subr.mxu0 %v1450_v62 }
 0x140   :  { %1591 = vmatprep.subr.mxu1 %v411_v51  ;;  %1867 = vmatpush3.msra.mxu0 %v1450_v62 }
 0x141   :  { %1592 = vmatpush3.msra.mxu1 %v395_v17  ;;  %1868 = vmatprep.subr.mxu0 %v1449_v61 }
 0x142   :  { %1593 = vmatprep.subr.mxu1 %v410_v32  ;;  %1869 = vmatpush3.msra.mxu0 %v1449_v61 }
 0x143   :  { %1594 = vmatpush3.msra.mxu1 %v394_v33  ;;  %1870 = vmatprep.subr.mxu0 %v1448_v0 }
 0x144   :  { %491 = vmatmul.mubr.f32.vlgmr.msra.gmra.mxu1 %v2041_v48  ;;  %1871 = vmatpush3.msra.mxu0 %v1448_v0 }
 0x145   :  { %931 = vmatprep.mubr.f32.mxu1 %v2041_v48  ;;  %1872 = vmatprep.subr.mxu0 %v1447_v63 }
 0x146   :  { %1873 = vmatpush3.msra.mxu0 %v1447_v63 }
 0x147   :  { %1874 = vmatprep.subr.mxu0 %v1446_v58 }
 0x148   :  { %1875 = vmatpush3.msra.mxu0 %v1446_v58 }
 0x1e4   :  { %v1560_v57 = vpop.f32.mrf.mxu1 }
 0x1e6   :  { %v1561_v60 = vpop.f32.mrf.mxu1 }
 0x1e7   :  { %v1562_v59 = vadd.f32 %v1561_v60, %v1560_v57 }
 0x1e9   :  { %v496_v53 = vmul.f32 0.00390625, %v1562_v59 }
 0x1eb   :  { %v498_v50 = vmul.f32 %v496_v53, %v496_v53 }
 0x204   :  { %v1595_v54 = vpop.f32.mrf.mxu1 }
 0x206   :  { %v1596_v56 = vpop.f32.mrf.mxu1 }
 0x207   :  { %v1597_v55 = vadd.f32 %v1596_v56, %v1595_v54 }
 0x209   :  { %v497_v51 = vmul.f32 0.00390625, %v1597_v55 }
 0x20b   :  { %v499_v17 = vsub.f32 %v497_v51, %v498_v50 }
 0x20d   :  { %v500_v32 = vmax.f32 %v499_v17, 0.0 }
 0x20f   :  { %v501_v33 = vadd.f32 1e-05, %v500_v32 }
 0x211   :  { %2037 = vrsqrt.f32 %v501_v33 }
 0x21e   :  { %v2038_v34 = vpop.eup %2037 }
 0x21f   :  { %v504_v36 = vrot.slane %v2038_v34, 7 }
 0x221   :  { %v506_v38 = vmul.f32 %v504_v36, %v2247_v12 }
 0x223   :  { %v508_v40 = vrot.slane %v506_v38, 1  ;;  %v2518_v3 = vrot.slane %v506_v38, %v517_v42 }
 0x225   :  { %v510_v44 = vmul.f32 %v508_v40, %v496_v53  ;;  %v519_v62 = vmul.f32 %v2518_v3, %v2392_v29  ;;  %v520_v61 = vmul.f32 %v2518_v3, %v2386_v49  ;;  %v521_v0 = vmul.f32 %v2518_v3, %v2380_v26 }
 0x226   :  { %v522_v57 = vmul.f32 %v2518_v3, %v2370_v23  ;;  %v523_v29 = vmul.f32 %v2518_v3, %v2360_v21  ;;  %v524_v26 = vmul.f32 %v2518_v3, %v2350_v19  ;;  %v525_v59 = vmul.f32 %v2518_v3, %v2340_v16 }
 0x227   :  { %v512_v46 = vrot.slane %v510_v44, 6  ;;  %v526_v21 = vmul.f32 %v2518_v3, %v2330_v14  ;;  %v527_v53 = vmul.f32 %v2518_v3, %v2320_v10  ;;  %v528_v16 = vmul.f32 %v2518_v3, %v2310_v8 }
 0x228   :  { %v529_v55 = vmul.f32 %v2518_v3, %v2300_v7  ;;  %v530_v10 = vmul.f32 %v2518_v3, %v2292_v45  ;;  %v531_v51 = vmul.f32 %v2518_v3, %v2284_v41  ;;  %v532_v7 = vmul.f32 %v2518_v3, %v2276_v37 }
 0x229   :  { %v514_v5 = vsub.f32 %v2247_v12, %v512_v46  ;;  %v533_v32 = vmul.f32 %v2518_v3, %v2263_v30  ;;  %v534_v41 = vmul.f32 %v2518_v3, %v2255_v24  ;;  %v535_v34 = vmul.f32 %v2518_v3, %v2389_v52 }
 0x22a   :  { %v536_v30 = vmul.f32 %v2518_v3, %v2383_v27  ;;  %v537_v38 = vmul.f32 %v2518_v3, %v2375_v25  ;;  %v538_v52 = vmul.f32 %v2518_v3, %v2365_v22  ;;  %v539_v44 = vmul.f32 %v2518_v3, %v2355_v20 }
 0x22b   :  { %v2523_v4 = vrot.slane %v514_v5, %v553_v1  ;;  %v540_v25 = vmul.f32 %v2518_v3, %v2345_v18  ;;  %v541_v5 = vmul.f32 %v2518_v3, %v2335_v15  ;;  %v542_v20 = vmul.f32 %v2518_v3, %v2325_v13 }
 0x22c   :  { %v544_v15 = vmul.f32 %v2518_v3, %v2305_v2 }
 0x22d   :  { %v556_v63 = vadd.f32 %v2523_v4, %v520_v61  ;;  %v555_v58 = vadd.f32 %v2523_v4, %v519_v62  ;;  %v557_v12 = vadd.f32 %v2523_v4, %v521_v0  ;;  %v558_v49 = vadd.f32 %v2523_v4, %v522_v57 }
 0x22e   :  { %v559_v60 = vadd.f32 %v2523_v4, %v523_v29  ;;  %v560_v54 = vadd.f32 %v2523_v4, %v524_v26  ;;  %v561_v23 = vadd.f32 %v2523_v4, %v525_v59  ;;  %v562_v56 = vadd.f32 %v2523_v4, %v526_v21 }
 0x22f   :  { %1876 = vmatprep.mubr.f32.mxu0 %v555_v58  ;;  %v563_v19 = vadd.f32 %v2523_v4, %v527_v53  ;;  %v564_v50 = vadd.f32 %v2523_v4, %v528_v16  ;;  %v565_v14 = vadd.f32 %v2523_v4, %v529_v55  ;;  %v566_v17 = vadd.f32 %v2523_v4, %v530_v10 }
 0x230   :  { %1877 = vmatmul.mubr.f32.vlgmr.msra.gmra.mxu0 %v556_v63  ;;  %v567_v8 = vadd.f32 %v2523_v4, %v531_v51  ;;  %v568_v33 = vadd.f32 %v2523_v4, %v532_v7  ;;  %v569_v45 = vadd.f32 %v2523_v4, %v533_v32  ;;  %v570_v36 = vadd.f32 %v2523_v4, %v534_v41 }
 0x231   :  { %1879 = vmatprep.mubr.f32.mxu0 %v557_v12  ;;  %v571_v37 = vadd.f32 %v2523_v4, %v535_v34  ;;  %v572_v40 = vadd.f32 %v2523_v4, %v536_v30  ;;  %v573_v24 = vadd.f32 %v2523_v4, %v537_v38  ;;  %v574_v46 = vadd.f32 %v2523_v4, %v538_v52 }
 0x232   :  { %v575_v27 = vadd.f32 %v2523_v4, %v539_v44  ;;  %v576_v62 = vadd.f32 %v2523_v4, %v540_v25  ;;  %v577_v22 = vadd.f32 %v2523_v4, %v541_v5  ;;  %v543_v61 = vmul.f32 %v2518_v3, %v2315_v9 }
 0x233   :  { %v578_v0 = vadd.f32 %v2523_v4, %v542_v20  ;;  %v545_v63 = vmul.f32 %v2518_v3, %v2296_v47  ;;  %v580_v58 = vadd.f32 %v2523_v4, %v544_v15  ;;  %v546_v9 = vmul.f32 %v2518_v3, %v2288_v43 }
 0x234   :  { %1880 = vmatmul.mubr.f32.gmra.mxu0 %v558_v49  ;;  %v579_v18 = vadd.f32 %v2523_v4, %v543_v61  ;;  %v547_v12 = vmul.f32 %v2518_v3, %v2280_v39  ;;  %v548_v47 = vmul.f32 %v2518_v3, %v2272_v35  ;;  %v549_v29 = vmul.f32 %v2518_v3, %v2265_v31 }
 0x235   :  { %1882 = vmatprep.mubr.f32.mxu0 %v559_v60  ;;  %v581_v13 = vadd.f32 %v2523_v4, %v545_v63  ;;  %v582_v57 = vadd.f32 %v2523_v4, %v546_v9  ;;  %v550_v39 = vmul.f32 %v2518_v3, %v2260_v28 }
 0x236   :  { %v583_v2 = vadd.f32 %v2523_v4, %v547_v12  ;;  %v584_v49 = vadd.f32 %v2523_v4, %v548_v47  ;;  %v585_v43 = vadd.f32 %v2523_v4, %v549_v29 }
 0x237   :  { %v586_v60 = vadd.f32 %v2523_v4, %v550_v39 }
 0x238   :  { %1883 = vmatmul.mubr.f32.gmra.mxu0 %v560_v54 }
 0x239   :  { %1885 = vmatprep.mubr.f32.mxu0 %v561_v23 }
 0x23c   :  { %1886 = vmatmul.mubr.f32.gmra.mxu0 %v562_v56 }
 0x23d   :  { %1888 = vmatprep.mubr.f32.mxu0 %v563_v19 }
 0x240   :  { %1889 = vmatmul.mubr.f32.gmra.mxu0 %v564_v50 }
 0x241   :  { %1891 = vmatprep.mubr.f32.mxu0 %v565_v14 }
 0x244   :  { %1892 = vmatmul.mubr.f32.gmra.mxu0 %v566_v17 }
 0x245   :  { %1894 = vmatprep.mubr.f32.mxu0 %v567_v8 }
 0x248   :  { %1895 = vmatmul.mubr.f32.gmra.mxu0 %v568_v33 }
 0x249   :  { %1897 = vmatprep.mubr.f32.mxu0 %v569_v45 }
 0x24c   :  { %1898 = vmatmul.mubr.f32.gmra.mxu0 %v570_v36 }
 0x24d   :  { %1900 = vmatprep.mubr.f32.mxu0 %v571_v37  ;;  %v2652_v37 = vld [vmem:[%s3157_s2 + $0x4] sm:$0x7] }
 0x24e   :  { %v2656_v38 = vrot.slane %v2652_v37, %v2242_v11 }
 0x250   :  { %1901 = vmatmul.mubr.f32.gmra.mxu0 %v572_v40 }
 0x251   :  { %1903 = vmatprep.mubr.f32.mxu0 %v573_v24 }
 0x254   :  { %1904 = vmatmul.mubr.f32.gmra.mxu0 %v574_v46 }
 0x255   :  { %1906 = vmatprep.mubr.f32.mxu0 %v575_v27 }
 0x258   :  { %1907 = vmatmul.mubr.f32.gmra.mxu0 %v576_v62 }
 0x259   :  { %1909 = vmatprep.mubr.f32.mxu0 %v577_v22 }
 0x25c   :  { %1910 = vmatmul.mubr.f32.gmra.mxu0 %v578_v0 }
 0x25d   :  { %1912 = vmatprep.mubr.f32.mxu0 %v579_v18 }
 0x260   :  { %1913 = vmatmul.mubr.f32.gmra.mxu0 %v580_v58 }
 0x261   :  { %1915 = vmatprep.mubr.f32.mxu0 %v581_v13 }
 0x264   :  { %1916 = vmatmul.mubr.f32.gmra.mxu0 %v582_v57 }
 0x265   :  { %1918 = vmatprep.mubr.f32.mxu0 %v583_v2 }
 0x268   :  { %1919 = vmatmul.mubr.f32.gmra.mxu0 %v584_v49 }
 0x269   :  { %1921 = vmatprep.mubr.f32.mxu0 %v585_v43 }
 0x26c   :  { %1922 = vmatmul.mubr.f32.gmra.mxu0 %v586_v60 }
 0x2f0   :  { %v2621_v26 = vpop.f32.mrf.mxu0 }
 0x2f2   :  { %v2623_v35 = vpop.f32.mrf.mxu0 }
 0x2f4   :  { %v2625_v59 = vpop.f32.mrf.mxu0 }
 0x2f6   :  { %v2627_v31 = vpop.f32.mrf.mxu0 }
 0x2f8   :  { %v2629_v54 = vpop.f32.mrf.mxu0 }
 0x2fa   :  { %v2631_v23 = vpop.f32.mrf.mxu0 }
 0x2fc   :  { %v2633_v21 = vpop.f32.mrf.mxu0 }
 0x2fe   :  { %v2635_v28 = vpop.f32.mrf.mxu0 }
 0x300   :  { %v1890_v3 = vpop.f32.mrf.mxu0 }
 0x301   :  { %v722_v43 = vadd.f32 %v1890_v3, %v2656_v38  ;;  %v712_v3 = vadd.f32 %v2633_v21, %v2656_v38 }
 0x302   :  { %v716_v53 = vpop.f32.mrf.mxu0 }
 0x304   :  { %v1893_v4 = vpop.f32.mrf.mxu0 }
 0x305   :  { %v732_v13 = vadd.f32 %v1893_v4, %v2656_v38 }
 0x306   :  { %v726_v56 = vpop.f32.mrf.mxu0 }
 0x307   :  { %v727_v2 = vadd.f32 %v726_v56, %v2656_v38  ;;  %v2697_v39 = vmax.f32 %v732_v13, 0.0  ;;  %v717_v56 = vadd.f32 %v716_v53, %v2656_v38 }
 0x308   :  { %v1896_v19 = vpop.f32.mrf.mxu0 }
 0x309   :  { %v742_v22 = vadd.f32 %v1896_v19, %v2656_v38  ;;  %v2705_v19 = vmax.f32 %v727_v2, 0.0 }
 0x30a   :  { %v736_v16 = vpop.f32.mrf.mxu0 }
 0x30b   :  { %v737_v18 = vadd.f32 %v736_v16, %v2656_v38  ;;  %v2681_v9 = vmax.f32 %v742_v22, 0.0 }
 0x30c   :  { %v1899_v55 = vpop.f32.mrf.mxu0 }
 0x30d   :  { %v752_v24 = vadd.f32 %v1899_v55, %v2656_v38  ;;  %v2689_v47 = vmax.f32 %v737_v18, 0.0  ;;  %v950_v2 = vmul.f32 %v2681_v9, %v2681_v9 }
 0x30e   :  { %v746_v50 = vpop.f32.mrf.mxu0 }
 0x30f   :  { %v747_v46 = vadd.f32 %v746_v50, %v2656_v38  ;;  %v2666_v20 = vmax.f32 %v752_v24, 0.0  ;;  %v2714_v50 = vmax.f32 %v722_v43, 0.0  ;;  %v949_v43 = vmul.f32 %v2689_v47, %v2689_v47 }
 0x310   :  { %v2637_v14 = vpop.f32.mrf.mxu0 }
 0x311   :  { %v2673_v15 = vmax.f32 %v747_v46, 0.0 }
 0x312   :  { %v2639_v10 = vpop.f32.mrf.mxu0 }
 0x313   :  { %v951_v13 = vmul.f32 %v2673_v15, %v2673_v15 }
 0x314   :  { %v2641_v51 = vpop.f32.mrf.mxu0 }
 0x316   :  { %v2643_v17 = vpop.f32.mrf.mxu0 }
 0x318   :  { %v2645_v8 = vpop.f32.mrf.mxu0 }
 0x319   :  { %v782_v21 = vadd.f32 %v2645_v8, %v2656_v38  ;;  %v697_v8 = vadd.f32 %v2631_v23, %v2656_v38  ;;  %v767_v23 = vadd.f32 %v2643_v17, %v2656_v38  ;;  %v682_v17 = vadd.f32 %v2621_v26, %v2656_v38 }
 0x31a   :  { %v2647_v7 = vpop.f32.mrf.mxu0 }
 0x31b   :  { %v2748_v24 = vmax.f32 %v782_v21, 0.0  ;;  %v2763_v46 = vmax.f32 %v697_v8, 0.0  ;;  %v2789_v26 = vmax.f32 %v682_v17, 0.0 }
 0x31c   :  { %v1911_v32 = vpop.f32.mrf.mxu0 }
 0x31d   :  { %v792_v16 = vadd.f32 %v1911_v32, %v2656_v38  ;;  %v707_v32 = vadd.f32 %v2635_v28, %v2656_v38  ;;  %v777_v28 = vadd.f32 %v2647_v7, %v2656_v38  ;;  %v692_v7 = vadd.f32 %v2625_v59, %v2656_v38 }
 0x31e   :  { %v786_v33 = vpop.f32.mrf.mxu0  ;;  %v762_v59 = vadd.f32 %v2637_v14, %v2656_v38  ;;  %v677_v14 = vadd.f32 %v2623_v35, %v2656_v38  ;;  %v941_v17 = vmul.f32 %v2763_v46, %v2763_v46 }
 0x320   :  { %v1914_v45 = vpop.f32.mrf.mxu0  ;;  %v2795_v18 = vmax.f32 %v677_v14, 0.0 }
 0x321   :  { %v802_v29 = vadd.f32 %v1914_v45, %v2656_v38  ;;  %v787_v45 = vadd.f32 %v786_v33, %v2656_v38  ;;  %v702_v33 = vadd.f32 %v2629_v54, %v2656_v38  ;;  %v772_v54 = vadd.f32 %v2641_v51, %v2656_v38 }
 0x322   :  { %v796_v41 = vpop.f32.mrf.mxu0  ;;  %v687_v51 = vadd.f32 %v2627_v31, %v2656_v38  ;;  %v757_v31 = vadd.f32 %v2639_v10, %v2656_v38 }
 0x323   :  { %v797_v60 = vadd.f32 %v796_v41, %v2656_v38  ;;  %v2709_v55 = vmax.f32 %v802_v29, 0.0  ;;  %v2723_v41 = vmax.f32 %v717_v56, 0.0  ;;  %v948_v56 = vmul.f32 %v2697_v39, %v2697_v39 }
 0x324   :  { %v1917_v34 = vpop.f32.mrf.mxu0  ;;  %v2783_v22 = vmax.f32 %v687_v51, 0.0  ;;  %v2792_v10 = vmax.f32 %v757_v31, 0.0 }
 0x325   :  { %v812_v63 = vadd.f32 %v1917_v34, %v2656_v38  ;;  %v2718_v53 = vmax.f32 %v797_v60, 0.0  ;;  %v2728_v34 = vmax.f32 %v792_v16, 0.0 }
 0x326   :  { %v806_v36 = vpop.f32.mrf.mxu0 }
 0x327   :  { %v807_v12 = vadd.f32 %v806_v36, %v2656_v38  ;;  %v2693_v49 = vmax.f32 %v812_v63, 0.0  ;;  %v2733_v36 = vmax.f32 %v712_v3, 0.0  ;;  %v947_v3 = vmul.f32 %v2705_v19, %v2705_v19 }
 0x328   :  { %v1920_v30 = vpop.f32.mrf.mxu0  ;;  %v961_v21 = vmul.f32 %v2718_v53, %v2718_v53 }
 0x329   :  { %v822_v25 = vadd.f32 %v1920_v30, %v2656_v38  ;;  %v2701_v4 = vmax.f32 %v807_v12, 0.0  ;;  %v2738_v30 = vmax.f32 %v787_v45, 0.0  ;;  %v964_v60 = vmul.f32 %v2693_v49, %v2693_v49 }
 0x32a   :  { %v816_v40 = vpop.f32.mrf.mxu0  ;;  %v962_v45 = vmul.f32 %v2709_v55, %v2709_v55  ;;  %v944_v8 = vmul.f32 %v2733_v36, %v2733_v36 }
 0x32b   :  { %v817_v61 = vadd.f32 %v816_v40, %v2656_v38  ;;  %v2677_v58 = vmax.f32 %v822_v25, 0.0  ;;  %v2743_v40 = vmax.f32 %v707_v32, 0.0  ;;  %v2773_v25 = vmax.f32 %v692_v7, 0.0 }
 0x32c   :  { %v1923_v52 = vpop.f32.mrf.mxu0  ;;  %v963_v16 = vmul.f32 %v2701_v4, %v2701_v4  ;;  %v946_v32 = vmul.f32 %v2714_v50, %v2714_v50 }
 0x32d   :  { %v832_v44 = vadd.f32 %v1923_v52, %v2656_v38  ;;  %v2685_v57 = vmax.f32 %v817_v61, 0.0  ;;  %v2753_v52 = vmax.f32 %v702_v33, 0.0  ;;  %v2786_v61 = vmax.f32 %v762_v59, 0.0 }
 0x32e   :  { %v826_v27 = vpop.f32.mrf.mxu0  ;;  %v966_v12 = vmul.f32 %v2677_v58, %v2677_v58  ;;  %v945_v33 = vmul.f32 %v2723_v41, %v2723_v41  ;;  %v943_v7 = vmul.f32 %v2743_v40, %v2743_v40  ;;  %v940_v14 = vmul.f32 %v2773_v25, %v2773_v25 }
 0x32f   :  { %v2662_v5 = vmax.f32 %v832_v44, 0.0  ;;  %v827_v62 = vadd.f32 %v826_v27, %v2656_v38  ;;  %v2758_v44 = vmax.f32 %v777_v28, 0.0  ;;  %v2768_v27 = vmax.f32 %v772_v54, 0.0 }
 0x330   :  { %v952_v38 = vmul.f32 %v2666_v20, %v2666_v20  ;;  %v965_v29 = vmul.f32 %v2685_v57, %v2685_v57  ;;  %v960_v28 = vmul.f32 %v2728_v34, %v2728_v34  ;;  %v959_v54 = vmul.f32 %v2738_v30, %v2738_v30 }
 0x331   :  { %v2669_v0 = vmax.f32 %v827_v62, 0.0  ;;  %1646 = vmatprep.subr.mxu1 %v2662_v5  ;;  %v2778_v62 = vmax.f32 %v767_v23, 0.0  ;;  %v968_v35 = vmul.f32 %v2662_v5, %v2662_v5  ;;  %v958_v23 = vmul.f32 %v2748_v24, %v2748_v24 }
 0x332   :  { %1647 = vmatpush3.msra.mxu1 %v2666_v20  ;;  %v942_v51 = vmul.f32 %v2753_v52, %v2753_v52  ;;  %v957_v59 = vmul.f32 %v2758_v44, %v2758_v44  ;;  %v956_v31 = vmul.f32 %v2768_v27, %v2768_v27 }
 0x333   :  { %1648 = vmatprep.subr.mxu1 %v2669_v0  ;;  %v967_v63 = vmul.f32 %v2669_v0, %v2669_v0 }
 0x334   :  { %1649 = vmatpush3.msra.mxu1 %v2673_v15 }
 0x335   :  { %1650 = vmatprep.subr.mxu1 %v2677_v58 }
 0x336   :  { %1651 = vmatpush3.msra.mxu1 %v2681_v9 }
 0x337   :  { %1652 = vmatprep.subr.mxu1 %v2685_v57 }
 0x338   :  { %1653 = vmatpush3.msra.mxu1 %v2689_v47 }
 0x339   :  { %1654 = vmatprep.subr.mxu1 %v2693_v49 }
 0x33a   :  { %1655 = vmatpush3.msra.mxu1 %v2697_v39 }
 0x33b   :  { %1656 = vmatprep.subr.mxu1 %v2701_v4 }
 0x33c   :  { %1657 = vmatpush3.msra.mxu1 %v2705_v19 }
 0x33d   :  { %1658 = vmatprep.subr.mxu1 %v2709_v55 }
 0x33e   :  { %1659 = vmatpush3.msra.mxu1 %v2714_v50 }
 0x33f   :  { %1660 = vmatprep.subr.mxu1 %v2718_v53 }
 0x340   :  { %1661 = vmatpush3.msra.mxu1 %v2723_v41 }
 0x341   :  { %1662 = vmatprep.subr.mxu1 %v2728_v34 }
 0x342   :  { %1663 = vmatpush3.msra.mxu1 %v2733_v36 }
 0x343   :  { %1664 = vmatprep.subr.mxu1 %v2738_v30 }
 0x344   :  { %1665 = vmatpush3.msra.mxu1 %v2743_v40 }
 0x345   :  { %1666 = vmatprep.subr.mxu1 %v2748_v24 }
 0x346   :  { %1667 = vmatpush3.msra.mxu1 %v2753_v52 }
 0x347   :  { %1668 = vmatprep.subr.mxu1 %v2758_v44 }
 0x348   :  { %1669 = vmatpush3.msra.mxu1 %v2763_v46 }
 0x349   :  { %1670 = vmatprep.subr.mxu1 %v2768_v27 }
 0x34a   :  { %1671 = vmatpush3.msra.mxu1 %v2773_v25 }
 0x34b   :  { %1672 = vmatprep.subr.mxu1 %v2778_v62 }
 0x34c   :  { %1673 = vmatpush3.msra.mxu1 %v2783_v22 }
 0x34d   :  { %1674 = vmatprep.subr.mxu1 %v2786_v61 }
 0x34e   :  { %1675 = vmatpush3.msra.mxu1 %v2789_v26 }
 0x34f   :  { %1676 = vmatprep.subr.mxu1 %v2792_v10 }
 0x350   :  { %1677 = vmatpush3.msra.mxu1 %v2795_v18 }
 0x351   :  { %932 = vmatmul.mubr.f32.vlgmr.msra.gmra.mxu1 %v2041_v48  ;;  %1681 = vmatprep.subr.mxu1 %v968_v35  ;;  %v955_v35 = vmul.f32 %v2778_v62, %v2778_v62 }
 0x352   :  { %1682 = vmatpush3.msra.mxu1 %v952_v38  ;;  %1033 = vmatprep.mubr.f32.mxu1 %v2041_v48  ;;  %v939_v38 = vmul.f32 %v2783_v22, %v2783_v22 }
 0x353   :  { %1683 = vmatprep.subr.mxu1 %v967_v63  ;;  %v954_v63 = vmul.f32 %v2786_v61, %v2786_v61 }
 0x354   :  { %1684 = vmatpush3.msra.mxu1 %v951_v13  ;;  %v938_v13 = vmul.f32 %v2789_v26, %v2789_v26 }
 0x355   :  { %1685 = vmatprep.subr.mxu1 %v966_v12  ;;  %v953_v12 = vmul.f32 %v2792_v10, %v2792_v10 }
 0x356   :  { %1686 = vmatpush3.msra.mxu1 %v950_v2  ;;  %v937_v2 = vmul.f32 %v2795_v18, %v2795_v18 }
 0x357   :  { %1687 = vmatprep.subr.mxu1 %v965_v29  ;;  %v1478_v29 = vld [vmem:[%s3155_s1 + $0x178] sm:$0xff] }
 0x358   :  { %1688 = vmatpush3.msra.mxu1 %v949_v43  ;;  %v1477_v43 = vld [vmem:[%s3155_s1 + $0x170] sm:$0xff]  ;;  %1924 = vmatprep.subr.mxu0 %v1478_v29 }
 0x359   :  { %1689 = vmatprep.subr.mxu1 %v964_v60  ;;  %1925 = vmatpush3.msra.mxu0 %v1478_v29  ;;  %v1476_v60 = vld [vmem:[%s3155_s1 + $0x168] sm:$0xff] }
 0x35a   :  { %1690 = vmatpush3.msra.mxu1 %v948_v56  ;;  %1926 = vmatprep.subr.mxu0 %v1477_v43  ;;  %v1474_v56 = vld [vmem:[%s3155_s1 + $0x158] sm:$0xff] }
 0x35b   :  { %1691 = vmatprep.subr.mxu1 %v963_v16  ;;  %1927 = vmatpush3.msra.mxu0 %v1477_v43  ;;  %v1473_v16 = vld [vmem:[%s3155_s1 + $0x150] sm:$0xff] }
 0x35c   :  { %1692 = vmatpush3.msra.mxu1 %v947_v3  ;;  %1928 = vmatprep.subr.mxu0 %v1476_v60  ;;  %v1472_v3 = vld [vmem:[%s3155_s1 + $0x148] sm:$0xff] }
 0x35d   :  { %1693 = vmatprep.subr.mxu1 %v962_v45  ;;  %1929 = vmatpush3.msra.mxu0 %v1476_v60  ;;  %v1471_v45 = vld [vmem:[%s3155_s1 + $0x140] sm:$0xff] }
 0x35e   :  { %1694 = vmatpush3.msra.mxu1 %v946_v32  ;;  %v1470_v32 = vld [vmem:[%s3155_s1 + $0x138] sm:$0xff] }
 0x35f   :  { %1695 = vmatprep.subr.mxu1 %v961_v21  ;;  %v1469_v21 = vld [vmem:[%s3155_s1 + $0x130] sm:$0xff] }
 0x360   :  { %1696 = vmatpush3.msra.mxu1 %v945_v33  ;;  %v1468_v33 = vld [vmem:[%s3155_s1 + $0x128] sm:$0xff] }
 0x361   :  { %1697 = vmatprep.subr.mxu1 %v960_v28  ;;  %v1467_v28 = vld [vmem:[%s3155_s1 + $0x120] sm:$0xff] }
 0x362   :  { %1698 = vmatpush3.msra.mxu1 %v944_v8  ;;  %v1466_v8 = vld [vmem:[%s3155_s1 + $0x118] sm:$0xff] }
 0x363   :  { %1699 = vmatprep.subr.mxu1 %v959_v54  ;;  %v1465_v54 = vld [vmem:[%s3155_s1 + $0x110] sm:$0xff] }
 0x364   :  { %1700 = vmatpush3.msra.mxu1 %v943_v7  ;;  %v1464_v7 = vld [vmem:[%s3155_s1 + $0x108] sm:$0xff] }
 0x365   :  { %1701 = vmatprep.subr.mxu1 %v958_v23  ;;  %v1463_v23 = vld [vmem:[%s3155_s1 + $0x100] sm:$0xff] }
 0x366   :  { %1702 = vmatpush3.msra.mxu1 %v942_v51 }
 0x367   :  { %1703 = vmatprep.subr.mxu1 %v957_v59 }
 0x368   :  { %1704 = vmatpush3.msra.mxu1 %v941_v17 }
 0x369   :  { %1705 = vmatprep.subr.mxu1 %v956_v31 }
 0x36a   :  { %1706 = vmatpush3.msra.mxu1 %v940_v14 }
 0x36b   :  { %1707 = vmatprep.subr.mxu1 %v955_v35 }
 0x36c   :  { %1708 = vmatpush3.msra.mxu1 %v939_v38 }
 0x36d   :  { %1709 = vmatprep.subr.mxu1 %v954_v63 }
 0x36e   :  { %1710 = vmatpush3.msra.mxu1 %v938_v13 }
 0x36f   :  { %1711 = vmatprep.subr.mxu1 %v953_v12 }
 0x370   :  { %1712 = vmatpush3.msra.mxu1 %v937_v2 }
 0x371   :  { %1034 = vmatmul.mubr.f32.vlgmr.msra.gmra.mxu1 %v2041_v48  ;;  %v1475_v48 = vld [vmem:[%s3155_s1 + $0x160] sm:$0xff] }
 0x372   :  { %1930 = vmatprep.subr.mxu0 %v1475_v48 }
 0x373   :  { %1931 = vmatpush3.msra.mxu0 %v1475_v48 }
 0x374   :  { %1932 = vmatprep.subr.mxu0 %v1474_v56 }
 0x375   :  { %1933 = vmatpush3.msra.mxu0 %v1474_v56 }
 0x376   :  { %1934 = vmatprep.subr.mxu0 %v1473_v16 }
 0x377   :  { %1935 = vmatpush3.msra.mxu0 %v1473_v16 }
 0x378   :  { %1936 = vmatprep.subr.mxu0 %v1472_v3 }
 0x379   :  { %1937 = vmatpush3.msra.mxu0 %v1472_v3 }
 0x37a   :  { %1938 = vmatprep.subr.mxu0 %v1471_v45 }
 0x37b   :  { %1939 = vmatpush3.msra.mxu0 %v1471_v45 }
 0x37c   :  { %1940 = vmatprep.subr.mxu0 %v1470_v32 }
 0x37d   :  { %1941 = vmatpush3.msra.mxu0 %v1470_v32 }
 0x37e   :  { %1942 = vmatprep.subr.mxu0 %v1469_v21 }
 0x37f   :  { %1943 = vmatpush3.msra.mxu0 %v1469_v21 }
 0x380   :  { %1944 = vmatprep.subr.mxu0 %v1468_v33 }
 0x381   :  { %1945 = vmatpush3.msra.mxu0 %v1468_v33 }
 0x382   :  { %1946 = vmatprep.subr.mxu0 %v1467_v28 }
 0x383   :  { %1947 = vmatpush3.msra.mxu0 %v1467_v28 }
 0x384   :  { %1948 = vmatprep.subr.mxu0 %v1466_v8 }
 0x385   :  { %1949 = vmatpush3.msra.mxu0 %v1466_v8 }
 0x386   :  { %1950 = vmatprep.subr.mxu0 %v1465_v54 }
 0x387   :  { %1951 = vmatpush3.msra.mxu0 %v1465_v54 }
 0x388   :  { %1952 = vmatprep.subr.mxu0 %v1464_v7 }
 0x389   :  { %1953 = vmatpush3.msra.mxu0 %v1464_v7 }
 0x38a   :  { %1954 = vmatprep.subr.mxu0 %v1463_v23 }
 0x38b   :  { %1955 = vmatpush3.msra.mxu0 %v1463_v23 }
 0x411   :  { %v1678_v51 = vpop.f32.mrf.mxu1 }
 0x413   :  { %v1679_v59 = vpop.f32.mrf.mxu1 }
 0x414   :  { %v1680_v17 = vadd.f32 %v1679_v59, %v1678_v51 }
 0x416   :  { %v1039_v14 = vmul.f32 0.00390625, %v1680_v17 }
 0x418   :  { %v1041_v63 = vmul.f32 %v1039_v14, %v1039_v14 }
 0x431   :  { %v1713_v31 = vpop.f32.mrf.mxu1 }
 0x433   :  { %v1714_v35 = vpop.f32.mrf.mxu1 }
 0x434   :  { %v1715_v38 = vadd.f32 %v1714_v35, %v1713_v31 }
 0x436   :  { %v1040_v13 = vmul.f32 0.00390625, %v1715_v38 }
 0x438   :  { %v1042_v12 = vsub.f32 %v1040_v13, %v1041_v63 }
 0x43a   :  { %v1043_v2 = vmax.f32 %v1042_v12, 0.0 }
 0x43c   :  { %v1044_v29 = vadd.f32 1e-05, %v1043_v2 }
 0x43e   :  { %2039 = vrsqrt.f32 %v1044_v29 }
 0x44b   :  { %v2040_v43 = vpop.eup %2039 }
 0x44c   :  { %v1047_v60 = vrot.slane %v2040_v43, 7 }
 0x44e   :  { %v1049_v48 = vmul.f32 %v2652_v37, %v1047_v60 }
 0x450   :  { %v1051_v56 = vrot.slane %v1049_v48, 1  ;;  %v2918_v45 = vrot.slane %v1049_v48, %v517_v42 }
 0x452   :  { %v1053_v16 = vmul.f32 %v1051_v56, %v1039_v14  ;;  %v1062_v33 = vmul.f32 %v2918_v45, %v2795_v18  ;;  %v1063_v28 = vmul.f32 %v2918_v45, %v2789_v26  ;;  %v1064_v8 = vmul.f32 %v2918_v45, %v2783_v22 }
 0x453   :  { %v1065_v6 = vmul.f32 %v2918_v45, %v2773_v25  ;;  %v1067_v22 = vmul.f32 %v2918_v45, %v2753_v52  ;;  %v1068_v7 = vmul.f32 %v2918_v45, %v2743_v40  ;;  %v1070_v51 = vmul.f32 %v2918_v45, %v2723_v41 }
 0x454   :  { %v1055_v3 = vrot.slane %v1053_v16, 6  ;;  %v1071_v40 = vmul.f32 %v2918_v45, %v2714_v50  ;;  %v1072_v17 = vmul.f32 %v2918_v45, %v2705_v19  ;;  %v1073_v41 = vmul.f32 %v2918_v45, %v2697_v39 }
 0x455   :  { %v1074_v14 = vmul.f32 %v2918_v45, %v2689_v47  ;;  %v1075_v19 = vmul.f32 %v2918_v45, %v2681_v9  ;;  %v1076_v38 = vmul.f32 %v2918_v45, %v2673_v15  ;;  %v1077_v47 = vmul.f32 %v2918_v45, %v2666_v20 }
 0x456   :  { %v1057_v32 = vsub.f32 %v2652_v37, %v1055_v3  ;;  %v1078_v13 = vmul.f32 %v2918_v45, %v2792_v10  ;;  %v1079_v15 = vmul.f32 %v2918_v45, %v2786_v61  ;;  %v1080_v2 = vmul.f32 %v2918_v45, %v2778_v62 }
 0x457   :  { %v1081_v10 = vmul.f32 %v2918_v45, %v2768_v27  ;;  %v1082_v43 = vmul.f32 %v2918_v45, %v2758_v44  ;;  %v1083_v62 = vmul.f32 %v2918_v45, %v2748_v24  ;;  %v1084_v48 = vmul.f32 %v2918_v45, %v2738_v30 }
 0x458   :  { %v2923_v21 = vrot.slane %v1057_v32, %v553_v1  ;;  %v1066_v1 = vmul.f32 %v2918_v45, %v2763_v46  ;;  %v1069_v46 = vmul.f32 %v2918_v45, %v2733_v36  ;;  %v1085_v44 = vmul.f32 %v2918_v45, %v2728_v34 }
 0x459   :  { %v1086_v16 = vmul.f32 %v2918_v45, %v2718_v53  ;;  %v1087_v30 = vmul.f32 %v2918_v45, %v2709_v55  ;;  %v1088_v32 = vmul.f32 %v2918_v45, %v2701_v4  ;;  %v1089_v53 = vmul.f32 %v2918_v45, %v2693_v49 }
 0x45a   :  { %v1099_v54 = vadd.f32 %v2923_v21, %v1063_v28  ;;  %v1098_v42 = vadd.f32 %v2923_v21, %v1062_v33  ;;  %v1100_v37 = vadd.f32 %v2923_v21, %v1064_v8  ;;  %v1101_v26 = vadd.f32 %v2923_v21, %v1065_v6 }
 0x45b   :  { %v1102_v18 = vadd.f32 %v2923_v21, %v1066_v1  ;;  %v1103_v23 = vadd.f32 %v2923_v21, %v1067_v22  ;;  %v1104_v25 = vadd.f32 %v2923_v21, %v1068_v7  ;;  %v1105_v59 = vadd.f32 %v2923_v21, %v1069_v46 }
 0x45c   :  { %1956 = vmatprep.mubr.f32.mxu0 %v1098_v42  ;;  %v1106_v52 = vadd.f32 %v2923_v21, %v1070_v51  ;;  %v1107_v31 = vadd.f32 %v2923_v21, %v1071_v40  ;;  %v1108_v36 = vadd.f32 %v2923_v21, %v1072_v17  ;;  %v1109_v35 = vadd.f32 %v2923_v21, %v1073_v41 }
 0x45d   :  { %1957 = vmatmul.mubr.f32.vlgmr.msra.gmra.mxu0 %v1099_v54  ;;  %v1110_v50 = vadd.f32 %v2923_v21, %v1074_v14  ;;  %v1111_v63 = vadd.f32 %v2923_v21, %v1075_v19  ;;  %v1112_v39 = vadd.f32 %v2923_v21, %v1076_v38  ;;  %v1113_v12 = vadd.f32 %v2923_v21, %v1077_v47 }
 0x45e   :  { %1959 = vmatprep.mubr.f32.mxu0 %v1100_v37  ;;  %v1114_v9 = vadd.f32 %v2923_v21, %v1078_v13  ;;  %v1115_v29 = vadd.f32 %v2923_v21, %v1079_v15  ;;  %v1116_v20 = vadd.f32 %v2923_v21, %v1080_v2  ;;  %v1117_v60 = vadd.f32 %v2923_v21, %v1081_v10 }
 0x45f   :  { %v1118_v61 = vadd.f32 %v2923_v21, %v1082_v43  ;;  %v1119_v56 = vadd.f32 %v2923_v21, %v1083_v62  ;;  %v1120_v27 = vadd.f32 %v2923_v21, %v1084_v48  ;;  %v1121_v3 = vadd.f32 %v2923_v21, %v1085_v44 }
 0x460   :  { %v1122_v24 = vadd.f32 %v2923_v21, %v1086_v16  ;;  %v1123_v33 = vadd.f32 %v2923_v21, %v1087_v30  ;;  %v1124_v34 = vadd.f32 %v2923_v21, %v1088_v32  ;;  %v1090_v28 = vmul.f32 %v2918_v45, %v2685_v57 }
 0x461   :  { %1960 = vmatmul.mubr.f32.gmra.mxu0 %v1101_v26  ;;  %v1125_v8 = vadd.f32 %v2923_v21, %v1089_v53  ;;  %v1091_v4 = vmul.f32 %v2918_v45, %v2677_v58  ;;  %v1092_v54 = vmul.f32 %v2918_v45, %v2669_v0  ;;  %v1093_v57 = vmul.f32 %v2918_v45, %v2662_v5  ;;  %v1479_v58 = vld [vmem:[%s3157_s2 + $0x8] sm:$0x7] }
 0x462   :  { %1962 = vmatprep.mubr.f32.mxu0 %v1102_v18  ;;  %v1126_v55 = vadd.f32 %v2923_v21, %v1090_v28  ;;  %v3025_v6 = vrot.slane %v1479_v58, %v2242_v11 }
 0x463   :  { %v1127_v42 = vadd.f32 %v2923_v21, %v1091_v4  ;;  %v1128_v49 = vadd.f32 %v2923_v21, %v1092_v54  ;;  %v1129_v37 = vadd.f32 %v2923_v21, %v1093_v57 }
 0x465   :  { %1963 = vmatmul.mubr.f32.gmra.mxu0 %v1103_v23 }
 0x466   :  { %1965 = vmatprep.mubr.f32.mxu0 %v1104_v25 }
 0x469   :  { %1966 = vmatmul.mubr.f32.gmra.mxu0 %v1105_v59 }
 0x46a   :  { %1968 = vmatprep.mubr.f32.mxu0 %v1106_v52 }
 0x46d   :  { %1969 = vmatmul.mubr.f32.gmra.mxu0 %v1107_v31 }
 0x46e   :  { %1971 = vmatprep.mubr.f32.mxu0 %v1108_v36 }
 0x471   :  { %1972 = vmatmul.mubr.f32.gmra.mxu0 %v1109_v35 }
 0x472   :  { %1974 = vmatprep.mubr.f32.mxu0 %v1110_v50 }
 0x475   :  { %1975 = vmatmul.mubr.f32.gmra.mxu0 %v1111_v63 }
 0x476   :  { %1977 = vmatprep.mubr.f32.mxu0 %v1112_v39 }
 0x479   :  { %1978 = vmatmul.mubr.f32.gmra.mxu0 %v1113_v12 }
 0x47a   :  { %1980 = vmatprep.mubr.f32.mxu0 %v1114_v9 }
 0x47d   :  { %1981 = vmatmul.mubr.f32.gmra.mxu0 %v1115_v29 }
 0x47e   :  { %1983 = vmatprep.mubr.f32.mxu0 %v1116_v20 }
 0x481   :  { %1984 = vmatmul.mubr.f32.gmra.mxu0 %v1117_v60 }
 0x482   :  { %1986 = vmatprep.mubr.f32.mxu0 %v1118_v61 }
 0x485   :  { %1987 = vmatmul.mubr.f32.gmra.mxu0 %v1119_v56 }
 0x486   :  { %1989 = vmatprep.mubr.f32.mxu0 %v1120_v27 }
 0x489   :  { %1990 = vmatmul.mubr.f32.gmra.mxu0 %v1121_v3 }
 0x48a   :  { %1992 = vmatprep.mubr.f32.mxu0 %v1122_v24 }
 0x48d   :  { %1993 = vmatmul.mubr.f32.gmra.mxu0 %v1123_v33 }
 0x48e   :  { %1995 = vmatprep.mubr.f32.mxu0 %v1124_v34 }
 0x491   :  { %1996 = vmatmul.mubr.f32.gmra.mxu0 %v1125_v8 }
 0x492   :  { %1998 = vmatprep.mubr.f32.mxu0 %v1126_v55 }
 0x495   :  { %1999 = vmatmul.mubr.f32.gmra.mxu0 %v1127_v42 }
 0x496   :  { %2001 = vmatprep.mubr.f32.mxu0 %v1128_v49 }
 0x499   :  { %2002 = vmatmul.mubr.f32.gmra.mxu0 %v1129_v37 }
 0x51d   :  { %v1958_v0 = vpop.f32.mrf.mxu0 }
 0x51e   :  { %v1225_v1 = vadd.f32 %v1958_v0, %v3025_v6 }
 0x51f   :  { %v1219_v26 = vpop.f32.mrf.mxu0 }
 0x520   :  { %v1379_v18 = vmax.f32 %v1225_v1, 0.0  ;;  %v1220_v22 = vadd.f32 %v1219_v26, %v3025_v6 }
 0x521   :  { %v1961_v5 = vpop.f32.mrf.mxu0 }
 0x522   :  { %1411 = vst [vmem:[%s3158_s3 + $0x8] sm:$0xff] %v1379_v18  ;;  %v1378_v45 = vmax.f32 %v1220_v22, 0.0  ;;  %v1235_v21 = vadd.f32 %v1961_v5, %v3025_v6 }
 0x523   :  { %v1229_v7 = vpop.f32.mrf.mxu0 }
 0x524   :  { %1410 = vst [vmem:[%s3158_s3] sm:$0xff] %v1378_v45  ;;  %v1381_v11 = vmax.f32 %v1235_v21, 0.0  ;;  %v1230_v23 = vadd.f32 %v1229_v7, %v3025_v6 }
 0x525   :  { %v1964_v25 = vpop.f32.mrf.mxu0 }
 0x526   :  { %1413 = vst [vmem:[%s3158_s3 + $0x18] sm:$0xff] %v1381_v11  ;;  %v1380_v46 = vmax.f32 %v1230_v23, 0.0  ;;  %v1245_v51 = vadd.f32 %v1964_v25, %v3025_v6 }
 0x527   :  { %v1239_v59 = vpop.f32.mrf.mxu0 }
 0x528   :  { %1412 = vst [vmem:[%s3158_s3 + $0x10] sm:$0xff] %v1380_v46  ;;  %v1383_v52 = vmax.f32 %v1245_v51, 0.0  ;;  %v1240_v40 = vadd.f32 %v1239_v59, %v3025_v6 }
 0x529   :  { %v1967_v17 = vpop.f32.mrf.mxu0 }
 0x52a   :  { %1415 = vst [vmem:[%s3158_s3 + $0x28] sm:$0xff] %v1383_v52  ;;  %v1382_v31 = vmax.f32 %v1240_v40, 0.0  ;;  %v1255_v36 = vadd.f32 %v1967_v17, %v3025_v6 }
 0x52b   :  { %v1249_v41 = vpop.f32.mrf.mxu0 }
 0x52c   :  { %1414 = vst [vmem:[%s3158_s3 + $0x20] sm:$0xff] %v1382_v31  ;;  %v1385_v14 = vmax.f32 %v1255_v36, 0.0  ;;  %v1250_v35 = vadd.f32 %v1249_v41, %v3025_v6 }
 0x52d   :  { %v1970_v50 = vpop.f32.mrf.mxu0 }
 0x52e   :  { %1417 = vst [vmem:[%s3158_s3 + $0x38] sm:$0xff] %v1385_v14  ;;  %v1384_v19 = vmax.f32 %v1250_v35, 0.0  ;;  %v1265_v38 = vadd.f32 %v1970_v50, %v3025_v6 }
 0x52f   :  { %v1259_v63 = vpop.f32.mrf.mxu0 }
 0x530   :  { %1416 = vst [vmem:[%s3158_s3 + $0x30] sm:$0xff] %v1384_v19  ;;  %v1387_v39 = vmax.f32 %v1265_v38, 0.0  ;;  %v1260_v47 = vadd.f32 %v1259_v63, %v3025_v6 }
 0x531   :  { %v1973_v13 = vpop.f32.mrf.mxu0 }
 0x532   :  { %1419 = vst [vmem:[%s3158_s3 + $0x48] sm:$0xff] %v1387_v39  ;;  %v1386_v12 = vmax.f32 %v1260_v47, 0.0  ;;  %v1275_v9 = vadd.f32 %v1973_v13, %v3025_v6 }
 0x533   :  { %v1269_v15 = vpop.f32.mrf.mxu0 }
 0x534   :  { %1418 = vst [vmem:[%s3158_s3 + $0x40] sm:$0xff] %v1386_v12  ;;  %v1389_v2 = vmax.f32 %v1275_v9, 0.0  ;;  %v1270_v29 = vadd.f32 %v1269_v15, %v3025_v6 }
 0x535   :  { %v1976_v20 = vpop.f32.mrf.mxu0 }
 0x536   :  { %1421 = vst [vmem:[%s3158_s3 + $0x58] sm:$0xff] %v1389_v2  ;;  %v1388_v10 = vmax.f32 %v1270_v29, 0.0  ;;  %v1285_v43 = vadd.f32 %v1976_v20, %v3025_v6 }
 0x537   :  { %v1279_v60 = vpop.f32.mrf.mxu0 }
 0x538   :  { %1420 = vst [vmem:[%s3158_s3 + $0x50] sm:$0xff] %v1388_v10  ;;  %v1391_v61 = vmax.f32 %v1285_v43, 0.0  ;;  %v1280_v62 = vadd.f32 %v1279_v60, %v3025_v6 }
 0x539   :  { %v1979_v48 = vpop.f32.mrf.mxu0 }
 0x53a   :  { %1423 = vst [vmem:[%s3158_s3 + $0x68] sm:$0xff] %v1391_v61  ;;  %v1390_v56 = vmax.f32 %v1280_v62, 0.0  ;;  %v1295_v27 = vadd.f32 %v1979_v48, %v3025_v6 }
 0x53b   :  { %v1289_v44 = vpop.f32.mrf.mxu0 }
 0x53c   :  { %1422 = vst [vmem:[%s3158_s3 + $0x60] sm:$0xff] %v1390_v56  ;;  %v1393_v16 = vmax.f32 %v1295_v27, 0.0  ;;  %v1290_v3 = vadd.f32 %v1289_v44, %v3025_v6 }
 0x53d   :  { %v1982_v24 = vpop.f32.mrf.mxu0 }
 0x53e   :  { %1425 = vst [vmem:[%s3158_s3 + $0x78] sm:$0xff] %v1393_v16  ;;  %v1392_v30 = vmax.f32 %v1290_v3, 0.0  ;;  %v1305_v32 = vadd.f32 %v1982_v24, %v3025_v6 }
 0x53f   :  { %v1299_v33 = vpop.f32.mrf.mxu0 }
 0x540   :  { %1424 = vst [vmem:[%s3158_s3 + $0x70] sm:$0xff] %v1392_v30  ;;  %v1395_v34 = vmax.f32 %v1305_v32, 0.0  ;;  %v1300_v53 = vadd.f32 %v1299_v33, %v3025_v6 }
 0x541   :  { %v1985_v28 = vpop.f32.mrf.mxu0 }
 0x542   :  { %1427 = vst [vmem:[%s3158_s3 + $0x88] sm:$0xff] %v1395_v34  ;;  %v1394_v8 = vmax.f32 %v1300_v53, 0.0  ;;  %v1315_v55 = vadd.f32 %v1985_v28, %v3025_v6 }
 0x543   :  { %v1309_v4 = vpop.f32.mrf.mxu0 }
 0x544   :  { %1426 = vst [vmem:[%s3158_s3 + $0x80] sm:$0xff] %v1394_v8  ;;  %v1397_v54 = vmax.f32 %v1315_v55, 0.0  ;;  %v1310_v42 = vadd.f32 %v1309_v4, %v3025_v6 }
 0x545   :  { %v1988_v49 = vpop.f32.mrf.mxu0 }
 0x546   :  { %1429 = vst [vmem:[%s3158_s3 + $0x98] sm:$0xff] %v1397_v54  ;;  %v1396_v57 = vmax.f32 %v1310_v42, 0.0  ;;  %v1325_v37 = vadd.f32 %v1988_v49, %v3025_v6 }
 0x547   :  { %v1319_v58 = vpop.f32.mrf.mxu0 }
 0x548   :  { %1428 = vst [vmem:[%s3158_s3 + $0x90] sm:$0xff] %v1396_v57  ;;  %v1399_v0 = vmax.f32 %v1325_v37, 0.0  ;;  %v1320_v1 = vadd.f32 %v1319_v58, %v3025_v6 }
 0x549   :  { %v1991_v26 = vpop.f32.mrf.mxu0 }
 0x54a   :  { %1431 = vst [vmem:[%s3158_s3 + $0xa8] sm:$0xff] %v1399_v0  ;;  %v1398_v18 = vmax.f32 %v1320_v1, 0.0  ;;  %v1335_v22 = vadd.f32 %v1991_v26, %v3025_v6 }
 0x54b   :  { %v1329_v5 = vpop.f32.mrf.mxu0 }
 0x54c   :  { %1430 = vst [vmem:[%s3158_s3 + $0xa0] sm:$0xff] %v1398_v18  ;;  %v1401_v45 = vmax.f32 %v1335_v22, 0.0  ;;  %v1330_v21 = vadd.f32 %v1329_v5, %v3025_v6 }
 0x54d   :  { %v1994_v7 = vpop.f32.mrf.mxu0 }
 0x54e   :  { %1433 = vst [vmem:[%s3158_s3 + $0xb8] sm:$0xff] %v1401_v45  ;;  %v1400_v11 = vmax.f32 %v1330_v21, 0.0  ;;  %v1345_v23 = vadd.f32 %v1994_v7, %v3025_v6 }
 0x54f   :  { %v1339_v25 = vpop.f32.mrf.mxu0 }
 0x550   :  { %1432 = vst [vmem:[%s3158_s3 + $0xb0] sm:$0xff] %v1400_v11  ;;  %v1403_v46 = vmax.f32 %v1345_v23, 0.0  ;;  %v1340_v51 = vadd.f32 %v1339_v25, %v3025_v6 }
 0x551   :  { %v1997_v59 = vpop.f32.mrf.mxu0 }
 0x552   :  { %1435 = vst [vmem:[%s3158_s3 + $0xc8] sm:$0xff] %v1403_v46  ;;  %v1402_v52 = vmax.f32 %v1340_v51, 0.0  ;;  %v1355_v40 = vadd.f32 %v1997_v59, %v3025_v6 }
 0x553   :  { %v1349_v17 = vpop.f32.mrf.mxu0 }
 0x554   :  { %1434 = vst [vmem:[%s3158_s3 + $0xc0] sm:$0xff] %v1402_v52  ;;  %v1405_v31 = vmax.f32 %v1355_v40, 0.0  ;;  %v1350_v36 = vadd.f32 %v1349_v17, %v3025_v6 }
 0x555   :  { %v2000_v41 = vpop.f32.mrf.mxu0 }
 0x556   :  { %1437 = vst [vmem:[%s3158_s3 + $0xd8] sm:$0xff] %v1405_v31  ;;  %v1404_v14 = vmax.f32 %v1350_v36, 0.0  ;;  %v1365_v35 = vadd.f32 %v2000_v41, %v3025_v6 }
 0x557   :  { %v1359_v50 = vpop.f32.mrf.mxu0 }
 0x558   :  { %1436 = vst [vmem:[%s3158_s3 + $0xd0] sm:$0xff] %v1404_v14  ;;  %v1407_v19 = vmax.f32 %v1365_v35, 0.0  ;;  %v1360_v38 = vadd.f32 %v1359_v50, %v3025_v6 }
 0x559   :  { %v2003_v63 = vpop.f32.mrf.mxu0 }
 0x55a   :  { %1439 = vst [vmem:[%s3158_s3 + $0xe8] sm:$0xff] %v1407_v19  ;;  %v1406_v39 = vmax.f32 %v1360_v38, 0.0  ;;  %v1375_v47 = vadd.f32 %v2003_v63, %v3025_v6 }
 0x55b   :  { %v1369_v13 = vpop.f32.mrf.mxu0 }
 0x55c   :  { %1438 = vst [vmem:[%s3158_s3 + $0xe0] sm:$0xff] %v1406_v39  ;;  %v1409_v12 = vmax.f32 %v1375_v47, 0.0  ;;  %v1370_v9 = vadd.f32 %v1369_v13, %v3025_v6 }
 0x55e   :  { %1441 = vst [vmem:[%s3158_s3 + $0xf8] sm:$0xff] %v1409_v12  ;;  %v1408_v15 = vmax.f32 %v1370_v9, 0.0 }
 0x560   :  { %1440 = vst [vmem:[%s3158_s3 + $0xf0] sm:$0xff] %v1408_v15 }

</bundles_post_ra>
